<compile_context>
chip_gen: v5e
topology: v5e:2x2
jax: 0.10.0
libtpu: 0.0.40
codegen_flags: <defaults>
</compile_context>

<pallas_src>
import functools

import jax
import jax.numpy as jnp
from jax import lax
from jax.experimental import pallas as pl
from jax.experimental.pallas import tpu as pltpu

NEG_SLOPE = 0.2


def _leaky_relu(v):
    return jnp.where(v >= 0, v, NEG_SLOPE * v)


def _round_up(x, m):
    return (x + m - 1) // m * m


def _vmem_capacity_bytes():
    try:
        return int(pltpu.get_tpu_info().vmem_capacity_bytes)
    except Exception:
        return 64 * 1024 * 1024            # conservative default, valid on all chips


def _is_v5e():
    try:
        kind = jax.devices()[0].device_kind.lower()
        return ("v5 lite" in kind) or ("v5e" in kind) or ("v5litepod" in kind)
    except Exception:
        return False


def _footprint_bytes(th, W, out_w1, cin3, ndf, c2, nc2, fold_kx):
    """Rough per-grid-step VMEM footprint of the fused kernel (bytes)."""
    r1 = th + 2
    fb = 0
    fb += 2 * 2 * (th + 4) * out_w1 * cin3            # bf16 input blocks, dbl-buffered
    fb += 2 * 2 * r1 * out_w1 * cin3                  # conv1 ky operands (~2 live)
    fb += (4 + 2) * r1 * out_w1 * ndf                 # conv1 result f32 + bf16 copy
    k2 = 3 * ndf if fold_kx else ndf
    fb += 2 * 2 * th * W * k2                         # conv2 operands (~2 live, bf16)
    fb += (4 + 2) * th * W * c2                       # conv2 acc f32 + bf16 copy
    fb += (4 + 4 + 2 * 4) * th * W * nc2              # heads f32, transpose, out blk x2
    fb += 2 * (3 * cin3 * ndf + 9 * ndf * c2 + c2 * nc2)   # bf16 weights
    return fb


def _pick_tile_h(N, H, W, out_w1, cin3, ndf, c2, nc2, fold_kx, budget, tile_h=None):
    if tile_h is not None:
        if H % tile_h:
            raise ValueError(f"tile_h={tile_h} must divide H={H}")
        if tile_h != H and (tile_h * W) % 128:
            raise ValueError("tile_h * W must be a multiple of 128 unless tile_h == H")
        return tile_h
    cands = [d for d in range(1, H + 1)
             if H % d == 0 and ((d * W) % 128 == 0 or d == H)]
    fitting = [d for d in cands
               if _footprint_bytes(d, W, out_w1, cin3, ndf, c2, nc2, fold_kx) <= budget]
    if not fitting:
        fitting = [min(cands)]             # smallest legal tile; may still be large
    if N == 1:                             # keep both v7x TensorCores busy
        multi = [d for d in fitting if H // d >= 2]
        if multi:
            return max(multi)
    return max(fitting)


# ---------------------------------------------------------------------------
# Fused kernel: conv1 -> LeakyReLU -> conv2 -> LeakyReLU -> [cls1|cls2]
# ---------------------------------------------------------------------------
def _fused_kernel(u0_ref, u1_ref, mid_ref, d0_ref, d1_ref,
                  w1_ref, b1_ref, w2_ref, b2_ref, wh_ref, bh_ref,
                  o_ref, *, valid_w, fold_kx):
    t = pl.program_id(1)
    n_t = pl.num_programs(1)
    th = mid_ref.shape[1]
    out_w1 = mid_ref.shape[2]
    c1 = w1_ref.shape[-1]
    r1 = th + 2
    vw = valid_w
    row0 = t * th                          # first image row of this tile
    h_img = n_t * th                       # full image height

    # ---- conv1 (3x3, SAME) + bias + LeakyReLU -------------------------------
    # kx taps are pre-folded into the channel axis by the wrapper, so conv1 is
    # 3 row-shifted bf16 MXU dots with K = 3*Cin, accumulated in f32.
    mid = mid_ref[0]                                    # (TH, out_w1, 3*Cin)
    u0, u1 = u0_ref[0, 0], u1_ref[0, 0]                 # rows row0-2, row0-1 (clamped)
    d0, d1 = d0_ref[0, 0], d1_ref[0, 0]                 # rows row0+TH, row0+TH+1
    zrow = jnp.zeros_like(u0)
    u0 = jnp.where(row0 >= 2, u0, zrow)                 # outside image -> zero pad
    u1 = jnp.where(row0 >= 1, u1, zrow)
    d0 = jnp.where(row0 + th <= h_img - 1, d0, zrow)
    d1 = jnp.where(row0 + th + 1 <= h_img - 1, d1, zrow)
    win = jnp.concatenate([u0[None], u1[None], mid, d0[None], d1[None]], axis=0)

    k1 = win.shape[-1]
    acc1 = jnp.zeros((r1 * out_w1, c1), jnp.float32)
    for ky in range(3):
        lhs = win[ky:ky + r1].reshape(r1 * out_w1, k1)
        acc1 = acc1 + jnp.dot(lhs, w1_ref[ky], preferred_element_type=jnp.float32)
    h1 = _leaky_relu(acc1 + b1_ref[...]).reshape(r1, out_w1, c1)

    # Zero the positions that act as conv2's SAME zero-padding: column 0
    # (image col -1), column vw+1 (image col W), plus the tile's first/last
    # halo row when it sits at the image top/bottom.  Small (rows, cols, 1)
    # iotas + a single lane-broadcast select.
    col = lax.broadcasted_iota(jnp.int32, (r1, out_w1, 1), 1)
    row = lax.broadcasted_iota(jnp.int32, (r1, out_w1, 1), 0)
    keep = ((col >= 1) & (col <= vw)
            & ((row > 0) | (row0 >= 1))
            & ((row < r1 - 1) | (row0 + th <= h_img - 1)))
    h1 = jnp.where(keep, h1, 0.0).astype(jnp.bfloat16)   # stays in VMEM

    # ---- conv2 (3x3, SAME) + bias + LeakyReLU -------------------------------
    c2 = w2_ref.shape[-1]
    acc2 = jnp.zeros((th * vw, c2), jnp.float32)
    if fold_kx:
        # Fold kx into the contraction: K = 3*C1 per ky (3 MXU dots / tile).
        h1c = jnp.concatenate(
            [h1[:, 0:vw, :], h1[:, 1:1 + vw, :], h1[:, 2:2 + vw, :]], axis=-1)
        for ky in range(3):
            lhs = h1c[ky:ky + th].reshape(th * vw, 3 * c1)
            acc2 = acc2 + jnp.dot(lhs, w2_ref[ky],
                                  preferred_element_type=jnp.float32)
    else:
        # v5e path: K = C1 is already the native 128-wide contraction.
        for ky in range(3):
            rows = h1[ky:ky + th]
            for kx in range(3):
                lhs = rows[:, kx:kx + vw, :].reshape(th * vw, c1)
                acc2 = acc2 + jnp.dot(lhs, w2_ref[ky, kx],
                                      preferred_element_type=jnp.float32)
    h2 = _leaky_relu(acc2 + b2_ref[...]).astype(jnp.bfloat16)   # (TH*W, C2)

    # ---- both 1x1 heads, stacked into one weight -----------------------------
    out = jnp.dot(h2, wh_ref[...], preferred_element_type=jnp.float32)
    out = out + bh_ref[...]                               # (TH*W, 2*nc)
    # Channel-major store -> the wrapper's NCHW output is a free reshape.
    o_ref[0] = jnp.transpose(out).astype(o_ref.dtype)


def _fused_call(xcat, w1r, b1, w2r, b2, wh, bh, *,
                tile_h, valid_w, fold_kx, vmem_limit):
    N, H, Wc, Cin3 = xcat.shape
    nc2 = wh.shape[-1]
    TH = tile_h
    nT = H // TH
    kernel = functools.partial(_fused_kernel, valid_w=valid_w, fold_kx=fold_kx)

    def clamp(r):
        return jnp.minimum(jnp.maximum(r, 0), H - 1)

    def row_spec(off):
        return pl.BlockSpec((1, 1, Wc, Cin3),
                            lambda n, t, off=off: (n, clamp(t * TH + off), 0, 0))

    w2_zeros = (0,) * w2r.ndim
    in_specs = [
        row_spec(-2),                                              # image row t*TH-2
        row_spec(-1),                                              # image row t*TH-1
        pl.BlockSpec((1, TH, Wc, Cin3), lambda n, t: (n, t, 0, 0)),  # mid rows
        row_spec(TH),                                              # image row (t+1)*TH
        row_spec(TH + 1),                                          # image row (t+1)*TH+1
        pl.BlockSpec(w1r.shape, lambda n, t: (0, 0, 0)),
        pl.BlockSpec(b1.shape, lambda n, t: (0, 0)),
        pl.BlockSpec(w2r.shape, lambda n, t: w2_zeros),
        pl.BlockSpec(b2.shape, lambda n, t: (0, 0)),
        pl.BlockSpec(wh.shape, lambda n, t: (0, 0)),
        pl.BlockSpec(bh.shape, lambda n, t: (0, 0)),
    ]
    return pl.pallas_call(
        kernel,
        out_shape=jax.ShapeDtypeStruct((N, nc2, H * valid_w), jnp.float32),
        grid=(N, nT),
        in_specs=in_specs,
        out_specs=pl.BlockSpec((1, nc2, TH * valid_w), lambda n, t: (n, 0, t)),
        compiler_params=pltpu.CompilerParams(
            dimension_semantics=("parallel", "parallel"),
            vmem_limit_bytes=vmem_limit),
    )(xcat, xcat, xcat, xcat, xcat, w1r, b1, w2r, b2, wh, bh)


# ---------------------------------------------------------------------------
# Module wrapper (PyTorch-equivalent forward, NCHW in / NCHW out)
# ---------------------------------------------------------------------------
def init_params(key, input_nc, ndf=128, num_classes=7):
    ks = jax.random.split(key, 8)
    def w_init(k, shape, fan_in):
        return jax.random.normal(k, shape, jnp.float32) / jnp.sqrt(fan_in)
    return {
        "w1": w_init(ks[0], (3, 3, input_nc, ndf), 9 * input_nc),      # HWIO
        "b1": jax.random.normal(ks[1], (ndf,), jnp.float32) * 0.01,
        "w2": w_init(ks[2], (3, 3, ndf, ndf // 2), 9 * ndf),
        "b2": jax.random.normal(ks[3], (ndf // 2,), jnp.float32) * 0.01,
        "wc1": w_init(ks[4], (ndf // 2, num_classes), ndf // 2),
        "bc1": jax.random.normal(ks[5], (num_classes,), jnp.float32) * 0.01,
        "wc2": w_init(ks[6], (ndf // 2, num_classes), ndf // 2),
        "bc2": jax.random.normal(ks[7], (num_classes,), jnp.float32) * 0.01,
    }


def pixel_discriminator_forward(params, x_nchw, *, tile_h=None, fold_kx=None):
    """NCHW float32 in -> NCHW float32 out, shape (N, 2*num_classes, H, W)."""
    N, Cin, H, W = x_nchw.shape
    ndf = params["w1"].shape[-1]
    c2 = params["w2"].shape[-1]
    nc = params["wc1"].shape[-1]
    nc2 = 2 * nc

    # conv2 kx-folding (K = 3*ndf) pays off on the 256-wide v6e/v7x MXU; on
    # v5e (128-wide) K = ndf is already native.  Only fold when the lane
    # concat it needs is 128-aligned.
    if fold_kx is None:
        fold_kx = not _is_v5e()
    fold_kx = bool(fold_kx) and (ndf % 128 == 0)

    vmem_cap = _vmem_capacity_bytes()
    vmem_limit = min(int(vmem_cap * 3) // 4, 112 * (1 << 20))   # 96 MiB on 128-MiB chips, 48 MiB on v7x

    out_w1 = _round_up(W + 2, 8)          # 8-aligned padded conv1 output width
    cin3 = 3 * Cin
    TH = _pick_tile_h(N, H, W, out_w1, cin3, ndf, c2, nc2, fold_kx,
                      budget=vmem_limit // 2, tile_h=tile_h)
    est = _footprint_bytes(TH, W, out_w1, cin3, ndf, c2, nc2, fold_kx)
    if est > vmem_limit // 2:             # fallback tile is large: raise the limit
        vmem_limit = max(vmem_limit, min(int(vmem_cap * 9) // 10, 2 * est))

    # NCHW -> NHWC, zero-pad W, and pre-fold conv1's 3 kx taps into the channel
    # (lane) axis on the tiny Cin input, so the kernel's conv1 needs no
    # in-kernel column shifts or relayouts.
    x = jnp.transpose(x_nchw, (0, 2, 3, 1))
    xz = jnp.pad(x, ((0, 0), (0, 0), (2, out_w1 - W), (0, 0)))
    xcat = jnp.concatenate([xz[:, :, 0:out_w1], xz[:, :, 1:1 + out_w1],
                            xz[:, :, 2:2 + out_w1]], axis=-1).astype(jnp.bfloat16)

    # Weights pre-reshaped + bf16 (MXU-rate operands; accumulation stays f32).
    w1r = params["w1"].reshape(3, 3 * Cin, ndf).astype(jnp.bfloat16)   # (ky, kx*ci, co)
    b1 = params["b1"].reshape(1, ndf).astype(jnp.float32)
    if fold_kx:
        w2r = params["w2"].reshape(3, 3 * ndf, c2).astype(jnp.bfloat16)
    else:
        w2r = params["w2"].astype(jnp.bfloat16)
    b2 = params["b2"].reshape(1, c2).astype(jnp.float32)
    wh = jnp.concatenate([params["wc1"], params["wc2"]], axis=1).astype(jnp.bfloat16)
    bh = jnp.concatenate([params["bc1"], params["bc2"]]).reshape(1, nc2).astype(jnp.float32)

    out = _fused_call(xcat, w1r, b1, w2r, b2, wh, bh,
                      tile_h=TH, valid_w=W, fold_kx=fold_kx,
                      vmem_limit=vmem_limit)
    return out.reshape(N, nc2, H, W)      # free reshape (already channel-major)


# ---------------------------------------------------------------------------
# Pure-JAX reference (mirrors the kernel's bf16 operand / f32 accumulation)
# ---------------------------------------------------------------------------
def _ref_forward(params, x_nchw):
    dn = ("NHWC", "HWIO", "NHWC")
    hp = lax.Precision.HIGHEST
    q = lambda v: v.astype(jnp.bfloat16).astype(jnp.float32)
    def conv(h, w, b, pad):
        return lax.conv_general_dilated(h, q(w), (1, 1), pad,
                                        dimension_numbers=dn, precision=hp) + b
    x = q(jnp.transpose(x_nchw, (0, 2, 3, 1)))
    h = q(_leaky_relu(conv(x, params["w1"], params["b1"], "SAME")))
    h = q(_leaky_relu(conv(h, params["w2"], params["b2"], "SAME")))
    o1 = conv(h, params["wc1"][None, None], params["bc1"], "VALID")
    o2 = conv(h, params["wc2"][None, None], params["bc2"], "VALID")
    out = jnp.concatenate([o1, o2], axis=-1)
    return jnp.transpose(out, (0, 3, 1, 2))


if __name__ == "__main__":
    # Small shapes consistent with the module: batch=2, input_nc=4, spatial=16,
    # ndf=128 (module default), num_classes=7.
    N, C_IN, H, W = 2, 4, 16, 16
    NDF, NUM_CLASSES = 128, 7

    key = jax.random.PRNGKey(0)
    k_x, k_p = jax.random.split(key)
    x = jax.random.normal(k_x, (N, C_IN, H, W), jnp.float32)       # NCHW input
    params = init_params(k_p, C_IN, ndf=NDF, num_classes=NUM_CLASSES)

    ref = jax.block_until_ready(_ref_forward(params, x))

    # tile_h=8 -> two H-tiles per image (exercises the in-tile halo recompute),
    # run with both conv2 contraction layouts (kx-folded and per-tap).
    for fold in (True, False):
        fwd = jax.jit(functools.partial(pixel_discriminator_forward,
                                        tile_h=8, fold_kx=fold))
        out = jax.block_until_ready(fwd(params, x))
        assert out.shape == (N, 2 * NUM_CLASSES, H, W), out.shape
        assert jnp.allclose(out, ref, rtol=2e-2, atol=2e-2), (
            fold, float(jnp.max(jnp.abs(out - ref))))

    # Auto-picked tile / auto chip detection (single H-tile here).
    fwd_auto = jax.jit(pixel_discriminator_forward)
    out2 = jax.block_until_ready(fwd_auto(params, x))
    assert jnp.allclose(out2, ref, rtol=2e-2, atol=2e-2), (
        float(jnp.max(jnp.abs(out2 - ref))))

    print("KERNEL_OK")
</pallas_src>

<mosaic_0001>
module attributes {stable_mosaic.version = 11 : i64} {
  func.func @_fused_kernel(%arg0: i32, %arg1: i32, %arg2: memref<1x1x24x12xbf16, #tpu.memory_space<vmem>>, %arg3: memref<1x1x24x12xbf16, #tpu.memory_space<vmem>>, %arg4: memref<1x8x24x12xbf16, #tpu.memory_space<vmem>>, %arg5: memref<1x1x24x12xbf16, #tpu.memory_space<vmem>>, %arg6: memref<1x1x24x12xbf16, #tpu.memory_space<vmem>>, %arg7: memref<3x12x128xbf16, #tpu.memory_space<vmem>>, %arg8: memref<1x128xf32, #tpu.memory_space<vmem>>, %arg9: memref<3x384x64xbf16, #tpu.memory_space<vmem>>, %arg10: memref<1x64xf32, #tpu.memory_space<vmem>>, %arg11: memref<64x14xbf16, #tpu.memory_space<vmem>>, %arg12: memref<1x14xf32, #tpu.memory_space<vmem>>, %arg13: memref<1x14x128xf32, #tpu.memory_space<vmem>>) attributes {dimension_semantics = [#tpu.dimension_semantics<parallel>, #tpu.dimension_semantics<parallel>], iteration_bounds = array<i64: 2, 2>, scalar_prefetch = 0 : i64, scratch_operands = 0 : i64, tpu.core_type = #tpu.core_type<tc>, window_params = [{transform_indices = @transform_0, window_bounds = array<i64: 1, 1, 24, 12>}, {transform_indices = @transform_1, window_bounds = array<i64: 1, 1, 24, 12>}, {transform_indices = @transform_2, window_bounds = array<i64: 1, 8, 24, 12>}, {transform_indices = @transform_3, window_bounds = array<i64: 1, 1, 24, 12>}, {transform_indices = @transform_4, window_bounds = array<i64: 1, 1, 24, 12>}, {pipeline_mode = #tpu.pipeline_mode<synchronous>, transform_indices = @transform_5, window_bounds = array<i64: 3, 12, 128>}, {pipeline_mode = #tpu.pipeline_mode<synchronous>, transform_indices = @transform_6, window_bounds = array<i64: 1, 128>}, {pipeline_mode = #tpu.pipeline_mode<synchronous>, transform_indices = @transform_7, window_bounds = array<i64: 3, 384, 64>}, {pipeline_mode = #tpu.pipeline_mode<synchronous>, transform_indices = @transform_8, window_bounds = array<i64: 1, 64>}, {pipeline_mode = #tpu.pipeline_mode<synchronous>, transform_indices = @transform_9, window_bounds = array<i64: 64, 14>}, {pipeline_mode = #tpu.pipeline_mode<synchronous>, transform_indices = @transform_10, window_bounds = array<i64: 1, 14>}, {transform_indices = @transform_11, window_bounds = array<i64: 1, 14, 128>}]} {
    %c8_i32 = arith.constant 8 : i32
    %0 = arith.muli %arg1, %c8_i32 : i32
    %c0 = arith.constant 0 : index
    %c0_0 = arith.constant 0 : index
    %c0_1 = arith.constant 0 : index
    %c0_2 = arith.constant 0 : index
    %1 = vector.load %arg4[%c0, %c0_0, %c0_1, %c0_2] : memref<1x8x24x12xbf16, #tpu.memory_space<vmem>>, vector<1x8x24x12xbf16>
    %2 = vector.shape_cast %1 : vector<1x8x24x12xbf16> to vector<8x24x12xbf16>
    %c0_3 = arith.constant 0 : index
    %c0_4 = arith.constant 0 : index
    %c0_5 = arith.constant 0 : index
    %c0_6 = arith.constant 0 : index
    %3 = vector.load %arg2[%c0_3, %c0_4, %c0_5, %c0_6] : memref<1x1x24x12xbf16, #tpu.memory_space<vmem>>, vector<1x1x24x12xbf16>
    %4 = vector.shape_cast %3 : vector<1x1x24x12xbf16> to vector<24x12xbf16>
    %c0_7 = arith.constant 0 : index
    %c0_8 = arith.constant 0 : index
    %c0_9 = arith.constant 0 : index
    %c0_10 = arith.constant 0 : index
    %5 = vector.load %arg3[%c0_7, %c0_8, %c0_9, %c0_10] : memref<1x1x24x12xbf16, #tpu.memory_space<vmem>>, vector<1x1x24x12xbf16>
    %6 = vector.shape_cast %5 : vector<1x1x24x12xbf16> to vector<24x12xbf16>
    %c0_11 = arith.constant 0 : index
    %c0_12 = arith.constant 0 : index
    %c0_13 = arith.constant 0 : index
    %c0_14 = arith.constant 0 : index
    %7 = vector.load %arg5[%c0_11, %c0_12, %c0_13, %c0_14] : memref<1x1x24x12xbf16, #tpu.memory_space<vmem>>, vector<1x1x24x12xbf16>
    %8 = vector.shape_cast %7 : vector<1x1x24x12xbf16> to vector<24x12xbf16>
    %c0_15 = arith.constant 0 : index
    %c0_16 = arith.constant 0 : index
    %c0_17 = arith.constant 0 : index
    %c0_18 = arith.constant 0 : index
    %9 = vector.load %arg6[%c0_15, %c0_16, %c0_17, %c0_18] : memref<1x1x24x12xbf16, #tpu.memory_space<vmem>>, vector<1x1x24x12xbf16>
    %10 = vector.shape_cast %9 : vector<1x1x24x12xbf16> to vector<24x12xbf16>
    %cst = arith.constant 0.000000e+00 : bf16
    %11 = vector.broadcast %cst : bf16 to vector<24x12xbf16>
    %c2_i32 = arith.constant 2 : i32
    %12 = arith.cmpi sge, %0, %c2_i32 : i32
    %13 = arith.select %12, %4, %11 : vector<24x12xbf16>
    %c1_i32 = arith.constant 1 : i32
    %14 = arith.cmpi sge, %0, %c1_i32 : i32
    %15 = arith.select %14, %6, %11 : vector<24x12xbf16>
    %c8_i32_19 = arith.constant 8 : i32
    %16 = arith.addi %0, %c8_i32_19 : i32
    %c15_i32 = arith.constant 15 : i32
    %17 = arith.cmpi sle, %16, %c15_i32 : i32
    %18 = arith.select %17, %8, %11 : vector<24x12xbf16>
    %c8_i32_20 = arith.constant 8 : i32
    %19 = arith.addi %0, %c8_i32_20 : i32
    %c1_i32_21 = arith.constant 1 : i32
    %20 = arith.addi %19, %c1_i32_21 : i32
    %c15_i32_22 = arith.constant 15 : i32
    %21 = arith.cmpi sle, %20, %c15_i32_22 : i32
    %22 = arith.select %21, %10, %11 : vector<24x12xbf16>
    %23 = vector.shape_cast %13 : vector<24x12xbf16> to vector<1x24x12xbf16>
    %24 = vector.shape_cast %15 : vector<24x12xbf16> to vector<1x24x12xbf16>
    %25 = vector.shape_cast %18 : vector<24x12xbf16> to vector<1x24x12xbf16>
    %26 = vector.shape_cast %22 : vector<24x12xbf16> to vector<1x24x12xbf16>
    %27 = tpu.concatenate %23, %24, %2, %25, %26 in 0 : vector<1x24x12xbf16>, vector<1x24x12xbf16>, vector<8x24x12xbf16>, vector<1x24x12xbf16>, vector<1x24x12xbf16> -> vector<12x24x12xbf16>
    %cst_23 = arith.constant 0.000000e+00 : f32
    %28 = vector.broadcast %cst_23 : f32 to vector<240x128xf32>
    %29 = vector.extract_strided_slice %27 {offsets = [0, 0, 0], sizes = [10, 24, 12], strides = [1, 1, 1]} : vector<12x24x12xbf16> to vector<10x24x12xbf16>
    %30 = vector.shape_cast %29 : vector<10x24x12xbf16> to vector<240x12xbf16>
    %c0_24 = arith.constant 0 : index
    %c0_25 = arith.constant 0 : index
    %c0_26 = arith.constant 0 : index
    %31 = vector.load %arg7[%c0_24, %c0_25, %c0_26] : memref<3x12x128xbf16, #tpu.memory_space<vmem>>, vector<1x12x128xbf16>
    %32 = vector.shape_cast %31 : vector<1x12x128xbf16> to vector<12x128xbf16>
    %cst_27 = arith.constant dense<0.000000e+00> : vector<240x128xf32>
    %33 = tpu.matmul %30, %32, %cst_27 {dimension_numbers = #tpu.dot_dimension_numbers<[1], [0], [0], [1], [0, 0, 1, 1], [], []>} : vector<240x12xbf16>, vector<12x128xbf16>, vector<240x128xf32> -> vector<240x128xf32>
    %34 = arith.addf %28, %33 : vector<240x128xf32>
    %35 = vector.extract_strided_slice %27 {offsets = [1, 0, 0], sizes = [10, 24, 12], strides = [1, 1, 1]} : vector<12x24x12xbf16> to vector<10x24x12xbf16>
    %36 = vector.shape_cast %35 : vector<10x24x12xbf16> to vector<240x12xbf16>
    %c1 = arith.constant 1 : index
    %c0_28 = arith.constant 0 : index
    %c0_29 = arith.constant 0 : index
    %37 = vector.load %arg7[%c1, %c0_28, %c0_29] : memref<3x12x128xbf16, #tpu.memory_space<vmem>>, vector<1x12x128xbf16>
    %38 = vector.shape_cast %37 : vector<1x12x128xbf16> to vector<12x128xbf16>
    %cst_30 = arith.constant dense<0.000000e+00> : vector<240x128xf32>
    %39 = tpu.matmul %36, %38, %cst_30 {dimension_numbers = #tpu.dot_dimension_numbers<[1], [0], [0], [1], [0, 0, 1, 1], [], []>} : vector<240x12xbf16>, vector<12x128xbf16>, vector<240x128xf32> -> vector<240x128xf32>
    %40 = arith.addf %34, %39 : vector<240x128xf32>
    %41 = vector.extract_strided_slice %27 {offsets = [2, 0, 0], sizes = [10, 24, 12], strides = [1, 1, 1]} : vector<12x24x12xbf16> to vector<10x24x12xbf16>
    %42 = vector.shape_cast %41 : vector<10x24x12xbf16> to vector<240x12xbf16>
    %c2 = arith.constant 2 : index
    %c0_31 = arith.constant 0 : index
    %c0_32 = arith.constant 0 : index
    %43 = vector.load %arg7[%c2, %c0_31, %c0_32] : memref<3x12x128xbf16, #tpu.memory_space<vmem>>, vector<1x12x128xbf16>
    %44 = vector.shape_cast %43 : vector<1x12x128xbf16> to vector<12x128xbf16>
    %cst_33 = arith.constant dense<0.000000e+00> : vector<240x128xf32>
    %45 = tpu.matmul %42, %44, %cst_33 {dimension_numbers = #tpu.dot_dimension_numbers<[1], [0], [0], [1], [0, 0, 1, 1], [], []>} : vector<240x12xbf16>, vector<12x128xbf16>, vector<240x128xf32> -> vector<240x128xf32>
    %46 = arith.addf %40, %45 : vector<240x128xf32>
    %c0_34 = arith.constant 0 : index
    %c0_35 = arith.constant 0 : index
    %47 = vector.load %arg8[%c0_34, %c0_35] : memref<1x128xf32, #tpu.memory_space<vmem>>, vector<1x128xf32>
    %48 = vector.broadcast %47 : vector<1x128xf32> to vector<240x128xf32>
    %49 = arith.addf %46, %48 : vector<240x128xf32>
    %cst_36 = arith.constant 0.000000e+00 : f32
    %50 = vector.broadcast %cst_36 : f32 to vector<240x128xf32>
    %51 = arith.cmpf oge, %49, %50 : vector<240x128xf32>
    %cst_37 = arith.constant 2.000000e-01 : f32
    %52 = vector.broadcast %cst_37 : f32 to vector<240x128xf32>
    %53 = arith.mulf %52, %49 : vector<240x128xf32>
    %54 = arith.select %51, %49, %53 : vector<240x128xi1>, vector<240x128xf32>
    %55 = vector.shape_cast %54 : vector<240x128xf32> to vector<10x24x128xf32>
    %56 = tpu.iota {dimensions = array<i32: 1>} : vector<10x24x1xi32>
    %57 = tpu.iota {dimensions = array<i32: 0>} : vector<10x24x1xi32>
    %c1_i32_38 = arith.constant 1 : i32
    %58 = vector.broadcast %c1_i32_38 : i32 to vector<10x24x1xi32>
    %59 = arith.cmpi sge, %56, %58 : vector<10x24x1xi32>
    %c16_i32 = arith.constant 16 : i32
    %60 = vector.broadcast %c16_i32 : i32 to vector<10x24x1xi32>
    %61 = arith.cmpi sle, %56, %60 : vector<10x24x1xi32>
    %62 = arith.andi %59, %61 : vector<10x24x1xi1>
    %c0_i32 = arith.constant 0 : i32
    %63 = vector.broadcast %c0_i32 : i32 to vector<10x24x1xi32>
    %64 = arith.cmpi sgt, %57, %63 : vector<10x24x1xi32>
    %c1_i32_39 = arith.constant 1 : i32
    %65 = arith.cmpi sge, %0, %c1_i32_39 : i32
    %66 = vector.broadcast %65 : i1 to vector<10x24x1xi1>
    %67 = arith.ori %64, %66 : vector<10x24x1xi1>
    %68 = arith.andi %62, %67 : vector<10x24x1xi1>
    %c9_i32 = arith.constant 9 : i32
    %69 = vector.broadcast %c9_i32 : i32 to vector<10x24x1xi32>
    %70 = arith.cmpi slt, %57, %69 : vector<10x24x1xi32>
    %c8_i32_40 = arith.constant 8 : i32
    %71 = arith.addi %0, %c8_i32_40 : i32
    %c15_i32_41 = arith.constant 15 : i32
    %72 = arith.cmpi sle, %71, %c15_i32_41 : i32
    %73 = vector.broadcast %72 : i1 to vector<10x24x1xi1>
    %74 = arith.ori %70, %73 : vector<10x24x1xi1>
    %75 = arith.andi %68, %74 : vector<10x24x1xi1>
    %cst_42 = arith.constant 0.000000e+00 : f32
    %76 = vector.shape_cast %75 : vector<10x24x1xi1> to vector<10x24x1xi1>
    %77 = vector.broadcast %76 : vector<10x24x1xi1> to vector<10x24x128xi1>
    %78 = vector.broadcast %cst_42 : f32 to vector<10x24x128xf32>
    %79 = arith.select %77, %55, %78 : vector<10x24x128xi1>, vector<10x24x128xf32>
    %80 = arith.truncf %79 : vector<10x24x128xf32> to vector<10x24x128xbf16>
    %cst_43 = arith.constant 0.000000e+00 : f32
    %81 = vector.broadcast %cst_43 : f32 to vector<128x64xf32>
    %82 = vector.extract_strided_slice %80 {offsets = [0, 0, 0], sizes = [10, 16, 128], strides = [1, 1, 1]} : vector<10x24x128xbf16> to vector<10x16x128xbf16>
    %83 = vector.extract_strided_slice %80 {offsets = [0, 1, 0], sizes = [10, 16, 128], strides = [1, 1, 1]} : vector<10x24x128xbf16> to vector<10x16x128xbf16>
    %84 = vector.extract_strided_slice %80 {offsets = [0, 2, 0], sizes = [10, 16, 128], strides = [1, 1, 1]} : vector<10x24x128xbf16> to vector<10x16x128xbf16>
    %85 = tpu.concatenate %82, %83, %84 in 2 : vector<10x16x128xbf16>, vector<10x16x128xbf16>, vector<10x16x128xbf16> -> vector<10x16x384xbf16>
    %86 = vector.extract_strided_slice %85 {offsets = [0, 0, 0], sizes = [8, 16, 384], strides = [1, 1, 1]} : vector<10x16x384xbf16> to vector<8x16x384xbf16>
    %87 = vector.shape_cast %86 : vector<8x16x384xbf16> to vector<128x384xbf16>
    %c0_44 = arith.constant 0 : index
    %c0_45 = arith.constant 0 : index
    %c0_46 = arith.constant 0 : index
    %88 = vector.load %arg9[%c0_44, %c0_45, %c0_46] : memref<3x384x64xbf16, #tpu.memory_space<vmem>>, vector<1x384x64xbf16>
    %89 = vector.shape_cast %88 : vector<1x384x64xbf16> to vector<384x64xbf16>
    %cst_47 = arith.constant dense<0.000000e+00> : vector<128x64xf32>
    %90 = tpu.matmul %87, %89, %cst_47 {dimension_numbers = #tpu.dot_dimension_numbers<[1], [0], [0], [1], [0, 0, 1, 1], [], []>} : vector<128x384xbf16>, vector<384x64xbf16>, vector<128x64xf32> -> vector<128x64xf32>
    %91 = arith.addf %81, %90 : vector<128x64xf32>
    %92 = vector.extract_strided_slice %85 {offsets = [1, 0, 0], sizes = [8, 16, 384], strides = [1, 1, 1]} : vector<10x16x384xbf16> to vector<8x16x384xbf16>
    %93 = vector.shape_cast %92 : vector<8x16x384xbf16> to vector<128x384xbf16>
    %c1_48 = arith.constant 1 : index
    %c0_49 = arith.constant 0 : index
    %c0_50 = arith.constant 0 : index
    %94 = vector.load %arg9[%c1_48, %c0_49, %c0_50] : memref<3x384x64xbf16, #tpu.memory_space<vmem>>, vector<1x384x64xbf16>
    %95 = vector.shape_cast %94 : vector<1x384x64xbf16> to vector<384x64xbf16>
    %cst_51 = arith.constant dense<0.000000e+00> : vector<128x64xf32>
    %96 = tpu.matmul %93, %95, %cst_51 {dimension_numbers = #tpu.dot_dimension_numbers<[1], [0], [0], [1], [0, 0, 1, 1], [], []>} : vector<128x384xbf16>, vector<384x64xbf16>, vector<128x64xf32> -> vector<128x64xf32>
    %97 = arith.addf %91, %96 : vector<128x64xf32>
    %98 = vector.extract_strided_slice %85 {offsets = [2, 0, 0], sizes = [8, 16, 384], strides = [1, 1, 1]} : vector<10x16x384xbf16> to vector<8x16x384xbf16>
    %99 = vector.shape_cast %98 : vector<8x16x384xbf16> to vector<128x384xbf16>
    %c2_52 = arith.constant 2 : index
    %c0_53 = arith.constant 0 : index
    %c0_54 = arith.constant 0 : index
    %100 = vector.load %arg9[%c2_52, %c0_53, %c0_54] : memref<3x384x64xbf16, #tpu.memory_space<vmem>>, vector<1x384x64xbf16>
    %101 = vector.shape_cast %100 : vector<1x384x64xbf16> to vector<384x64xbf16>
    %cst_55 = arith.constant dense<0.000000e+00> : vector<128x64xf32>
    %102 = tpu.matmul %99, %101, %cst_55 {dimension_numbers = #tpu.dot_dimension_numbers<[1], [0], [0], [1], [0, 0, 1, 1], [], []>} : vector<128x384xbf16>, vector<384x64xbf16>, vector<128x64xf32> -> vector<128x64xf32>
    %103 = arith.addf %97, %102 : vector<128x64xf32>
    %c0_56 = arith.constant 0 : index
    %c0_57 = arith.constant 0 : index
    %104 = vector.load %arg10[%c0_56, %c0_57] : memref<1x64xf32, #tpu.memory_space<vmem>>, vector<1x64xf32>
    %105 = vector.broadcast %104 : vector<1x64xf32> to vector<128x64xf32>
    %106 = arith.addf %103, %105 : vector<128x64xf32>
    %cst_58 = arith.constant 0.000000e+00 : f32
    %107 = vector.broadcast %cst_58 : f32 to vector<128x64xf32>
    %108 = arith.cmpf oge, %106, %107 : vector<128x64xf32>
    %cst_59 = arith.constant 2.000000e-01 : f32
    %109 = vector.broadcast %cst_59 : f32 to vector<128x64xf32>
    %110 = arith.mulf %109, %106 : vector<128x64xf32>
    %111 = arith.select %108, %106, %110 : vector<128x64xi1>, vector<128x64xf32>
    %112 = arith.truncf %111 : vector<128x64xf32> to vector<128x64xbf16>
    %c0_60 = arith.constant 0 : index
    %c0_61 = arith.constant 0 : index
    %113 = vector.load %arg11[%c0_60, %c0_61] : memref<64x14xbf16, #tpu.memory_space<vmem>>, vector<64x14xbf16>
    %cst_62 = arith.constant dense<0.000000e+00> : vector<128x14xf32>
    %114 = tpu.matmul %112, %113, %cst_62 {dimension_numbers = #tpu.dot_dimension_numbers<[1], [0], [0], [1], [0, 0, 1, 1], [], []>} : vector<128x64xbf16>, vector<64x14xbf16>, vector<128x14xf32> -> vector<128x14xf32>
    %c0_63 = arith.constant 0 : index
    %c0_64 = arith.constant 0 : index
    %115 = vector.load %arg12[%c0_63, %c0_64] : memref<1x14xf32, #tpu.memory_space<vmem>>, vector<1x14xf32>
    %116 = vector.broadcast %115 : vector<1x14xf32> to vector<128x14xf32>
    %117 = arith.addf %114, %116 : vector<128x14xf32>
    %118 = tpu.transpose %117, [1, 0] : vector<128x14xf32> -> vector<14x128xf32>
    %c0_65 = arith.constant 0 : index
    %c0_66 = arith.constant 0 : index
    %c0_67 = arith.constant 0 : index
    %119 = vector.load %arg13[%c0_65, %c0_66, %c0_67] : memref<1x14x128xf32, #tpu.memory_space<vmem>>, vector<1x14x128xf32>
    %120 = vector.shape_cast %119 : vector<1x14x128xf32> to vector<14x128xf32>
    %121 = vector.shape_cast %118 : vector<14x128xf32> to vector<1x14x128xf32>
    tpu.vector_store %arg13[%c0_65, %c0_66, %c0_67], %121 {strides = array<i32>} : memref<1x14x128xf32, #tpu.memory_space<vmem>>, vector<1x14x128xf32>,
    return
  }
  func.func @transform_0(%arg0: i32, %arg1: i32) -> (i32, i32, i32, i32) {
    %c8_i32 = arith.constant 8 : i32
    %0 = arith.muli %arg1, %c8_i32 : i32
    %c-2_i32 = arith.constant -2 : i32
    %1 = arith.addi %0, %c-2_i32 : i32
    %c0_i32 = arith.constant 0 : i32
    %2 = arith.maxsi %1, %c0_i32 : i32
    %c15_i32 = arith.constant 15 : i32
    %3 = arith.minsi %2, %c15_i32 : i32
    %c0_i32_0 = arith.constant 0 : i32
    %c0_i32_1 = arith.constant 0 : i32
    %c0_i32_2 = arith.constant 0 : i32
    return %arg0, %3, %c0_i32_0, %c0_i32_1 : i32, i32, i32, i32
  }
  func.func @transform_1(%arg0: i32, %arg1: i32) -> (i32, i32, i32, i32) {
    %c8_i32 = arith.constant 8 : i32
    %0 = arith.muli %arg1, %c8_i32 : i32
    %c-1_i32 = arith.constant -1 : i32
    %1 = arith.addi %0, %c-1_i32 : i32
    %c0_i32 = arith.constant 0 : i32
    %2 = arith.maxsi %1, %c0_i32 : i32
    %c15_i32 = arith.constant 15 : i32
    %3 = arith.minsi %2, %c15_i32 : i32
    %c0_i32_0 = arith.constant 0 : i32
    %c0_i32_1 = arith.constant 0 : i32
    %c0_i32_2 = arith.constant 0 : i32
    return %arg0, %3, %c0_i32_0, %c0_i32_1 : i32, i32, i32, i32
  }
  func.func @transform_2(%arg0: i32, %arg1: i32) -> (i32, i32, i32, i32) {
    %c0_i32 = arith.constant 0 : i32
    %c0_i32_0 = arith.constant 0 : i32
    %c0_i32_1 = arith.constant 0 : i32
    return %arg0, %arg1, %c0_i32, %c0_i32_0 : i32, i32, i32, i32
  }
  func.func @transform_3(%arg0: i32, %arg1: i32) -> (i32, i32, i32, i32) {
    %c8_i32 = arith.constant 8 : i32
    %0 = arith.muli %arg1, %c8_i32 : i32
    %c8_i32_0 = arith.constant 8 : i32
    %1 = arith.addi %0, %c8_i32_0 : i32
    %c0_i32 = arith.constant 0 : i32
    %2 = arith.maxsi %1, %c0_i32 : i32
    %c15_i32 = arith.constant 15 : i32
    %3 = arith.minsi %2, %c15_i32 : i32
    %c0_i32_1 = arith.constant 0 : i32
    %c0_i32_2 = arith.constant 0 : i32
    %c0_i32_3 = arith.constant 0 : i32
    return %arg0, %3, %c0_i32_1, %c0_i32_2 : i32, i32, i32, i32
  }
  func.func @transform_4(%arg0: i32, %arg1: i32) -> (i32, i32, i32, i32) {
    %c8_i32 = arith.constant 8 : i32
    %0 = arith.muli %arg1, %c8_i32 : i32
    %c9_i32 = arith.constant 9 : i32
    %1 = arith.addi %0, %c9_i32 : i32
    %c0_i32 = arith.constant 0 : i32
    %2 = arith.maxsi %1, %c0_i32 : i32
    %c15_i32 = arith.constant 15 : i32
    %3 = arith.minsi %2, %c15_i32 : i32
    %c0_i32_0 = arith.constant 0 : i32
    %c0_i32_1 = arith.constant 0 : i32
    %c0_i32_2 = arith.constant 0 : i32
    return %arg0, %3, %c0_i32_0, %c0_i32_1 : i32, i32, i32, i32
  }
  func.func @transform_5(%arg0: i32, %arg1: i32) -> (i32, i32, i32) {
    %c0_i32 = arith.constant 0 : i32
    %c0_i32_0 = arith.constant 0 : i32
    %c0_i32_1 = arith.constant 0 : i32
    %c0_i32_2 = arith.constant 0 : i32
    return %c0_i32, %c0_i32_0, %c0_i32_1 : i32, i32, i32
  }
  func.func @transform_6(%arg0: i32, %arg1: i32) -> (i32, i32) {
    %c0_i32 = arith.constant 0 : i32
    %c0_i32_0 = arith.constant 0 : i32
    %c0_i32_1 = arith.constant 0 : i32
    return %c0_i32, %c0_i32_0 : i32, i32
  }
  func.func @transform_7(%arg0: i32, %arg1: i32) -> (i32, i32, i32) {
    %c0_i32 = arith.constant 0 : i32
    %c0_i32_0 = arith.constant 0 : i32
    %c0_i32_1 = arith.constant 0 : i32
    %c0_i32_2 = arith.constant 0 : i32
    return %c0_i32, %c0_i32_0, %c0_i32_1 : i32, i32, i32
  }
  func.func @transform_8(%arg0: i32, %arg1: i32) -> (i32, i32) {
    %c0_i32 = arith.constant 0 : i32
    %c0_i32_0 = arith.constant 0 : i32
    %c0_i32_1 = arith.constant 0 : i32
    return %c0_i32, %c0_i32_0 : i32, i32
  }
  func.func @transform_9(%arg0: i32, %arg1: i32) -> (i32, i32) {
    %c0_i32 = arith.constant 0 : i32
    %c0_i32_0 = arith.constant 0 : i32
    %c0_i32_1 = arith.constant 0 : i32
    return %c0_i32, %c0_i32_0 : i32, i32
  }
  func.func @transform_10(%arg0: i32, %arg1: i32) -> (i32, i32) {
    %c0_i32 = arith.constant 0 : i32
    %c0_i32_0 = arith.constant 0 : i32
    %c0_i32_1 = arith.constant 0 : i32
    return %c0_i32, %c0_i32_0 : i32, i32
  }
  func.func @transform_11(%arg0: i32, %arg1: i32) -> (i32, i32, i32) {
    %c0_i32 = arith.constant 0 : i32
    %c0_i32_0 = arith.constant 0 : i32
    return %arg0, %c0_i32, %arg1 : i32, i32, i32
  }
}

</mosaic_0001>

<bundles_post_ra>
// kernel: pixel_discriminator_forward.1
= control target key start
LH: loop header
LB: loop body
LE: loop exit
PB: predicated region body
PF: predicated region fallthrough
CT: control target
= control target key end

     0   :  { %s5443_s0 = inlined_call_operand.vmem [shape: bf16[2,16,24,12], index: 0, kind: input, shape index: {}, may-alias: {0,1,2,3,4}]   ;;  %s5444_s1 = inlined_call_operand.vmem [shape: bf16[2,16,24,12], index: 1, kind: input, shape index: {}, may-alias: {0,1,2,3,4}]   ;;  %s5445_s2 = inlined_call_operand.vmem [shape: bf16[2,16,24,12], index: 2, kind: input, shape index: {}, may-alias: {0,1,2,3,4}]   ;;  %s5446_s3 = inlined_call_operand.vmem [shape: bf16[2,16,24,12], index: 3, kind: input, shape index: {}, may-alias: {0,1,2,3,4}]   ;;  %s5447_s4 = inlined_call_operand.vmem [shape: bf16[2,16,24,12], index: 4, kind: input, shape index: {}, may-alias: {0,1,2,3,4}]   ;;  %s5448_s5 = inlined_call_operand.vmem [shape: bf16[3,12,128], index: 5, kind: input, shape index: {}]   ;;  %s5449_s6 = inlined_call_operand.vmem [shape: f32[1,128], index: 6, kind: input, shape index: {}]   ;;  %s5450_s7 = inlined_call_operand.vmem [shape: bf16[3,384,64], index: 7, kind: input, shape index: {}]   ;;  %s5451_s8 = inlined_call_operand.vmem [shape: f32[1,64], index: 8, kind: input, shape index: {}]   ;;  %s5452_s9 = inlined_call_operand.vmem [shape: bf16[64,14], index: 9, kind: input, shape index: {}]   ;;  %s5453_s10 = inlined_call_operand.vmem [shape: f32[1,14], index: 10, kind: input, shape index: {}]   ;;  %s5454_s11 = inlined_call_operand.vmem [shape: f32[2,14,256], index: 11, kind: output, shape index: {}]  }
   0x1   :  { %5459 = sst [smem:[#allocation46_spill]] %s5445_s2 }
   0x2   :  { %5460 = sst [smem:[#allocation47_spill]] %s5448_s5 }
   0x3   :  { %s4244_s17 = smov 0   ;;  %s4246_s18 = smov 0  }
   0x4   :  { %s4248_s19 = smov 0   ;;  %s4250_s20 = smov 0  }
   0x5   :  { %s4252_s21 = smov 0   ;;  %s4254_s22 = smov 0  }
   0x6   :  { %s4256_s23 = smov 0  }
   0x7 LB: > { %5461 = sst [smem:[#allocation3_spill]] %s4174_s21  ;;  %s30_s24 = sadd.s32 1, %s4174_s21  ;;  %s4182_s23 = sphi %s4256_s23, %s21_s23   ;;  %s4178_s22 = sphi %s4254_s22, %s5559_s22   ;;  %s4174_s21 = sphi %s4252_s21, %s5558_s21   ;;  %s4170_s20 = sphi %s4250_s20, %s5557_s20   ;;  %s4166_s19 = sphi %s4248_s19, %s5556_s19   ;;  %s4162_s18 = sphi %s4246_s18, %s5561_s18   ;;  %s4158_s17 = sphi %s4244_s17, %s5560_s17  }
   0x8   : > { %5462 = sst [smem:[#allocation4_spill]] %s4178_s22  ;;  %p31_p0 = scmp.ge.s32.totalorder %s30_s24, 2 }
   0x9   : > { %s33_s25 = sadd.s32 1, %s4178_s22  ;;  %s3255_s26 = sadd.s32 4294967295, %s4182_s23  }
   0xa   : > { %p366_p1 = scmp.ne.s32.totalorder %s4162_s18, %s4158_s17  ;;  %s5563_s24 = smov (%p31_p0, %s30_s24), 0 }
   0xb   : > { %5463 = sst [smem:[#allocation5_spill]] %s5563_s24  ;;  %s5565_s25 = smov (!%p31_p0, %s33_s25), %s4178_s22 }
   0xc   : > { %s352_s27 = ssub.s32 %s4174_s21, %s5563_s24  ;;  %p367_p2 = scmp.eq.s32.totalorder %s3255_s26, 3 }
   0xd   : > { %p35_p3 = scmp.ge.s32.totalorder %s5565_s25, 2  ;;  %p3307_p4 = scmp.ge.s32.totalorder %s4182_s23, 1 }
   0xe   : > { %p4290_p5 = por %p367_p2, %p366_p1  ;;  %p519_p6 = scmp.lt.s32.totalorder %s4182_s23, 5 }
   0xf   : > { %s5567_s25 = smov (%p35_p3, %s5565_s25), 0  ;;  %s356_s12 = sadd.s32 1, %s4162_s18 }
  0x10   : > { %5465 = sst [smem:[#allocation6_spill]] %s5567_s25  ;;  %p520_p7 = pnand %p3307_p4, %p519_p6 }
  0x11   : > { %s351_s29 = ssub.s32 %s4178_s22, %s5567_s25 }
  0x12   : > { %s353_s30 = sor.u32 %s352_s27, %s351_s29  ;;  %523 = sbr.rel (%p520_p7) target bundleno = 1025 (0x401), region = 64 }
  0x13   : > { %p354_p8 = scmp.eq.s32.totalorder %s353_s30, 0 }
  0x15   : > { %s4301_s13 = scalar_select %p354_p8, %s4162_s18, %s356_s12  }
  0x17   : > { %vm917_vm0 = vcmask 1045504   ;;  %s5466_s5 = sld [smem:[#allocation47_spill]]  ;;  %s4310_s24 = sshll.u32 %s4166_s19, 3  ;;  %vm871_vm1 = vcmask 97280   ;;  %v3872_v60 = vld [vmem:[%s5450_s7 + $0xf8] sm:$0xff] }
  0x18   : > { %p629_p9 = scmp.lt.s32.totalorder %s4170_s20, 1  ;;  %p668_p10 = scmp.lt.s32.totalorder %s4310_s24, 15  ;;  %4032 = vmatpush.bf16.msra.mxu3 %v3872_v60  ;;  %v3888_v14 = vld [vmem:[%s5450_s7 + $0x178] sm:$0xff] }
  0x19   : > { %s645_s14 = sadd.s32 4294967295, %s4310_s24  ;;  %p763_p11 = scmp.ge.s32.totalorder %s4310_s24, 1 }
  0x1a   : > { %s630_s15 = scalar_select %p629_p9, %s4170_s20, 1 }
  0x1b   : > { %s669_s27 = scalar_select %p668_p10, %s4310_s24, 15 }
  0x1c   : > { %s4331_s29 = smul.u32 48, %s630_s15  ;;  %p646_p12 = scmp.gt.s32.totalorder %s645_s14, 0 }
  0x1d   : > { %v3384_v0 = vld [vmem:[%s5466_s5 + $0x10] sm:$0xf]  ;;  %v3840_v1 = vld [vmem:[%s5466_s5 + $0x10] sm:$0x30]  ;;  %v3344_v3 = vld [vmem:[%s5466_s5 + $0x8] sm:$0xf] }
  0x1e   : > { %v3385_v2 = vor.u32 %v3840_v1, %v3384_v0  ;;  %v3839_v4 = vld [vmem:[%s5466_s5 + $0x8] sm:$0x30]  ;;  %v3363_v7 = vld [vmem:[%s5466_s5] sm:$0xf]  ;;  %v3838_v8 = vld [vmem:[%s5466_s5] sm:$0x30] }
  0x1f   : > { %v3345_v6 = vor.u32 %v3839_v4, %v3344_v3  ;;  %v3364_v9 = vor.u32 %v3838_v8, %v3363_v7  ;;  %s4065_s30 = smul.u32 3, %s669_s27  ;;  %p3317_p13 = scmp.lt.s32.totalorder %s645_s14, 15  ;;  %v3856_v0 = vld [vmem:[%s5450_s7 + $0x78] sm:$0xff] }
  0x20   : > { %v1190_v5 = vsel %vm917_vm0, %v3385_v2, 0  ;;  %s5569_s14 = smov (!%p646_p12, %s645_s14), 0  ;;  %s677_s25 = sadd.s32 8, %s4310_s24  ;;  %v3848_v1 = vld [vmem:[%s5450_s7 + $0x38] sm:$0xff] }
  0x21   : > { %1199 = vmatpush.bf16.msra.mxu2 %v1190_v5  ;;  %v919_v10 = vsel %vm917_vm0, %v3345_v6, 0  ;;  %v1077_v11 = vsel %vm917_vm0, %v3364_v9, 0  ;;  %s672_s22 = sadd.s32 %s4065_s30, %s4331_s29  ;;  %p678_p0 = scmp.gt.s32.totalorder %s677_s25, 0  ;;  %vm1623_vm0 = vsmask.f32 7424 }
  0x22   : > { %928 = vmatpush.bf16.msra.mxu0 %v919_v10  ;;  %4031 = vmatpush.bf16.msra.mxu1 %v919_v10  ;;  %s3324_s12 = sshll.u32 %s672_s22, 2  ;;  %s5467_s2 = sld [smem:[#allocation46_spill]] }
  0x23   : > { %p3326_p1 = scmp.lt.s32.totalorder %s677_s25, 15  ;;  %s5571_s14 = smov (!%p3317_p13, %s5569_s14), 15 }
  0x24   : > { %s764_s27 = scalar_select %p763_p11, 1, 0 }
  0x25   : > { %p652_p2 = scmp.lt.s32.totalorder %s5571_s14, 15  ;;  %s4350_s15 = sadd.s32 4294967294, %s4310_s24  ;;  %2376 = vmatpush.bf16.msrb.mxu2 %v3856_v0  ;;  %v3867_v0 = vld [vmem:[%s5450_s7 + $0xd0] sm:$0xff] }
  0x26   : > { %1086 = vmatpush.bf16.msrb.mxu1 %v1077_v11  ;;  %s679_s30 = scalar_select %p678_p0, %s677_s25, 0  ;;  %v765_v13 = vstv %s764_s27  ;;  %2036 = vmatpush.bf16.msrb.mxu0 %v3872_v60 }
  0x27   : > { %s5573_s14 = smov (!%p652_p2, %s5571_s14), 15  ;;  %p771_p4 = scmp.le.s32.totalorder %s677_s25, 15  ;;  %vm4353_vm2 = vcmp.eq.s32.totalorder %v765_v13, 1 }
  0x28   : > { %s4340_s26 = scalar_lea.vmem %s5467_s2, %s3324_s12  ;;  %s5575_s30 = smov (!%p3326_p1, %s679_s30), 15 }
  0x29   : > { %v4343_v12 = vld [vmem:[%s4340_s26] sm:$0xff]   ;;  %s4064_s22 = smul.u32 3, %s5573_s14  ;;  %p684_p3 = scmp.lt.s32.totalorder %s5575_s30, 15  ;;  %v4369_v22 = vld [vmem:[%s4340_s26 + $0x8] sm:$0xff]   ;;  %v3966_v43 = vld [vmem:[%s4340_s26 + $0x10] sm:$0xff]  }
  0x2a   : > { %3386 = vmatmul.msk.bf16.vlgmr.msra.gmra.mxu2 %vm871_vm1, %v4343_v12  ;;  %p625_p6 = scmp.gt.s32.totalorder %s4350_s15, 0  ;;  %p3310_p7 = scmp.lt.s32.totalorder %s4350_s15, 15  ;;  %v3919_v35 = vunpack.c.l.b16 %v4343_v12  ;;  %v4042_v48 = vld [vmem:[%s4340_s26 + $0x4] sm:$0xff]   ;;  %v3967_v50 = vld [vmem:[%s4340_s26 + $0x18] sm:$0xff]   ;;  %v4044_v53 = vld [vmem:[%s4340_s26 + $0xc] sm:$0xff]  }
  0x2b   : > { %s656_s12 = sadd.s32 %s4064_s22, %s4331_s29  ;;  %s5577_s30 = smov (!%p684_p3, %s5575_s30), 15  ;;  %v3968_v54 = vld [vmem:[%s4340_s26 + $0x20] sm:$0xff]   ;;  %v4046_v56 = vld [vmem:[%s4340_s26 + $0x14] sm:$0xff]   ;;  %v3969_v57 = vld [vmem:[%s4340_s26 + $0x28] sm:$0xff]  }
  0x2c   : > { %s3322_s16 = sshll.u32 %s656_s12, 2  ;;  %s4066_s25 = smul.u32 3, %s5577_s30  ;;  %v4048_v58 = vld [vmem:[%s4340_s26 + $0x1c] sm:$0xff]   ;;  %v4442_v59 = vld [vmem:[%s4340_s26 + $0x30] sm:$0xff]   ;;  %v4050_v61 = vld [vmem:[%s4340_s26 + $0x24] sm:$0xff]  }
  0x2d   : > { %s658_s21 = scalar_lea.vmem %s5444_s1, %s3322_s16  ;;  %p756_p8 = scmp.ge.s32.totalorder %s4310_s24, 2  ;;  %v4454_v62 = vld [vmem:[%s4340_s26 + $0x38] sm:$0xff]   ;;  %v4052_v63 = vld [vmem:[%s4340_s26 + $0x2c] sm:$0xff]   ;;  %v4468_v2 = vld [vmem:[%s4340_s26 + $0x40] sm:$0xff]  }
  0x2e   : > { %v747_v15 = vld [vmem:[%s658_s21] sm:$0xf]  ;;  %v748_v16 = vld [vmem:[%s658_s21 + $0x4] sm:$0xf]  ;;  %s772_s14 = scalar_select %p771_p4, 1, 0 }
  0x2f   : > { %v767_v17 = vsel %vm4353_vm2, %v747_v15, 0  ;;  %v768_v18 = vsel %vm4353_vm2, %v748_v16, 0  ;;  %s626_s2 = scalar_select %p625_p6, %s4350_s15, 0  ;;  %v749_v29 = vld [vmem:[%s658_s21 + $0x8] sm:$0xf]  ;;  %v4054_v5 = vld [vmem:[%s4340_s26 + $0x34] sm:$0xff]  }
  0x30   : > { %v821_v19 = vunpack.c.l.b16 %v767_v17  ;;  %v4365_v20 = vunpack.c.l.b16 %v768_v18  ;;  %v773_v21 = vstv %s772_s14  ;;  %s688_s5 = sadd.s32 %s4066_s25, %s4331_s29  ;;  %v769_v33 = vsel %vm4353_vm2, %v749_v29, 0  ;;  %v4482_v7 = vld [vmem:[%s4340_s26 + $0x48] sm:$0xff]   ;;  %v4056_v15 = vld [vmem:[%s4340_s26 + $0x3c] sm:$0xff]   ;;  %v4501_v17 = vld [vmem:[%s4340_s26 + $0x50] sm:$0xff]  }
  0x31   : > { %s3331_s27 = sshll.u32 %s688_s5, 2  ;;  %vm4375_vm3 = vcmp.eq.s32.totalorder %v773_v21, 1  ;;  %s5579_s2 = smov (!%p3310_p7, %s626_s2), 15  ;;  %v823_v36 = vunpack.c.l.b16 %v769_v33  ;;  %v3855_v18 = vld [vmem:[%s5450_s7 + $0x70] sm:$0xff] }
  0x32   : > { %v851_v23 = vpack.c.b16 %v4365_v20, %v821_v19  ;;  %s4383_s30 = scalar_lea.vmem %s5446_s3, %s3331_s27  ;;  %p631_p9 = scmp.lt.s32.totalorder %s5579_s2, 15  ;;  %2377 = vmatpush.bf16.msrb.mxu2 %v3855_v18 }
  0x33   : > { %v751_v25 = vld [vmem:[%s4383_s30 + $0x4] sm:$0xf]  ;;  %v752_v26 = vld [vmem:[%s4383_s30 + $0x8] sm:$0xf]  ;;  %s757_s16 = scalar_select %p756_p8, 1, 0  ;;  %v852_v38 = vpack.c.b16 %v3919_v35, %v823_v36  ;;  %v1013_v55 = vpack.c.b16 %v823_v36, %v4365_v20 }
  0x34   : > { %3346 = vmatmul.msk.bf16.vlgmr.msra.gmra.mxu0 %vm871_vm1, %v851_v23  ;;  %v776_v27 = vsel %vm4375_vm3, %v751_v25, 0  ;;  %v777_v28 = vsel %vm4375_vm3, %v752_v26, 0  ;;  %s5581_s2 = smov (!%p631_p9, %s5579_s2), 15  ;;  %s4504_s5 = sadd.s32 9, %s4310_s24  ;;  %v4058_v26 = vld [vmem:[%s4340_s26 + $0x44] sm:$0xff]  }
  0x35   : > { %v4395_v30 = vunpack.c.l.b16 %v776_v27  ;;  %v4397_v31 = vunpack.c.l.b16 %v777_v28  ;;  %s4062_s15 = smul.u32 3, %s5581_s2  ;;  %v758_v34 = vstv %s757_s16  ;;  %p699_p10 = scmp.gt.s32.totalorder %s4504_s5, 0  ;;  %v4529_v28 = vld [vmem:[%s4340_s26 + $0x58] sm:$0xff]   ;;  %v750_v29 = vld [vmem:[%s4383_s30] sm:$0xf] }
  0x36   : > { %vm4406_vm4 = vcmp.eq.s32.totalorder %v758_v34, 1  ;;  %p3333_p11 = scmp.lt.s32.totalorder %s4504_s5, 15  ;;  %v775_v35 = vsel %vm4375_vm3, %v750_v29, 0  ;;  %p779_p13 = scmp.le.s32.totalorder %s4504_s5, 15 }
  0x37   : > { %v865_v32 = vpack.c.b16 %v4397_v31, %v4395_v30  ;;  %s635_s21 = sadd.s32 %s4331_s29, %s4062_s15  ;;  %v4547_v37 = vunpack.c.l.b16 %v775_v35  ;;  %v3865_v35 = vld [vmem:[%s5450_s7 + $0xc0] sm:$0xff] }
  0x38   : > { %s3315_s14 = sshll.u32 %s635_s21, 2 }
  0x39   : > { %3360 = vmatmul.msk.bf16.vlgmr.msra.gmra.mxu1 %vm871_vm1, %v865_v32  ;;  %s637_s27 = scalar_lea.vmem %s5443_s0, %s3315_s14  ;;  %v3870_v32 = vld [vmem:[%s5450_s7 + $0xe8] sm:$0xff] }
  0x3a   : > { %3387 = vmatmul.msk.bf16.gmra.mxu2 %vm871_vm1, %v4369_v22  ;;  %v744_v39 = vld [vmem:[%s637_s27] sm:$0xf]  ;;  %v745_v40 = vld [vmem:[%s637_s27 + $0x4] sm:$0xf]  ;;  %v746_v47 = vld [vmem:[%s637_s27 + $0x8] sm:$0xf]  ;;  %2327 = vmatpush.bf16.msra.mxu1 %v3848_v1 }
  0x3b   : > { %v760_v41 = vsel %vm4406_vm4, %v744_v39, 0  ;;  %v761_v42 = vsel %vm4406_vm4, %v745_v40, 0  ;;  %v762_v49 = vsel %vm4406_vm4, %v746_v47, 0  ;;  %s700_s24 = scalar_select %p699_p10, %s4504_s5, 0  ;;  %v4060_v40 = vld [vmem:[%s4340_s26 + $0x4c] sm:$0xff]   ;;  %v3869_v47 = vld [vmem:[%s5450_s7 + $0xe0] sm:$0xff] }
  0x3c   : > { %v1008_v44 = vunpack.c.l.b16 %v760_v41  ;;  %v1009_v45 = vunpack.c.l.b16 %v761_v42  ;;  %v1010_v51 = vunpack.c.l.b16 %v762_v49  ;;  %s780_s14 = scalar_select %p779_p13, 1, 0  ;;  %v1172_v41 = vpack.c.b16 %v4395_v30, %v4547_v37  ;;  %v3852_v1 = vld [vmem:[%s5450_s7 + $0x58] sm:$0xff] }
  0x3d   : > { %s5583_s24 = smov (!%p3333_p11, %s700_s24), 15  ;;  %s3810_s27 = sshll.u32 (%p4290_p5), %s4170_s20, 2 }
  0x3e   : > { %v1011_v46 = vpack.c.b16 %v1009_v45, %v1008_v44  ;;  %v1012_v52 = vpack.c.b16 %v821_v19, %v1010_v51  ;;  %p705_p12 = scmp.lt.s32.totalorder %s5583_s24, 15  ;;  %v3854_v44 = vld [vmem:[%s5450_s7 + $0x68] sm:$0xff] }
  0x3f   : > { %2378 = vmatpush.bf16.msrb.mxu2 %v3854_v44 }
  0x40   : > { %s5585_s24 = smov (!%p705_p12, %s5583_s24), 15 }
  0x41   : > { %s4067_s21 = smul.u32 3, %s5585_s24 }
  0x43   : > { %s709_s30 = sadd.s32 %s4067_s21, %s4331_s29 }
  0x44   : > { %3347 = vmatmul.msk.bf16.gmra.mxu0 %vm871_vm1, %v852_v38  ;;  %s3338_s25 = sshll.u32 %s709_s30, 2 }
  0x45   : > { %s4562_s24 = scalar_lea.vmem %s5447_s4, %s3338_s25 }
  0x46   : > { %v753_v30 = vld [vmem:[%s4562_s24] sm:$0xf] }
  0x49   : > { %3365 = vmatmul.msk.bf16.vlgmr.msrb.gmra.mxu1 %vm871_vm1, %v1011_v46 }
  0x4a   : > { %3388 = vmatmul.msk.bf16.gmra.mxu2 %vm871_vm1, %v3966_v43 }
  0x54   : > { %3348 = vmatmul.msk.bf16.gmra.mxu0 %vm871_vm1, %v4042_v48 }
  0x59   : > { %3366 = vmatmul.msk.bf16.gmra.mxu1 %vm871_vm1, %v1012_v52 }
  0x5a   : > { %3389 = vmatmul.msk.bf16.gmra.mxu2 %vm871_vm1, %v3967_v50 }
  0x64   : > { %3349 = vmatmul.msk.bf16.gmra.mxu0 %vm871_vm1, %v4044_v53 }
  0x69   : > { %3367 = vmatmul.msk.bf16.gmra.mxu1 %vm871_vm1, %v1013_v55  ;;  %v3868_v55 = vld [vmem:[%s5450_s7 + $0xd8] sm:$0xff] }
  0x6a   : > { %3390 = vmatmul.msk.bf16.gmra.mxu2 %vm871_vm1, %v3968_v54 }
  0x74   : > { %3350 = vmatmul.msk.bf16.gmra.mxu0 %vm871_vm1, %v4046_v56  ;;  %v3853_v56 = vld [vmem:[%s5450_s7 + $0x60] sm:$0xff] }
  0x75   : > { %2379 = vmatpush.bf16.msrb.mxu2 %v3853_v56 }
  0x79   : > { %3368 = vmatmul.msk.bf16.gmra.mxu1 %vm871_vm1, %v4343_v12  ;;  %v3871_v12 = vld [vmem:[%s5450_s7 + $0xf0] sm:$0xff]  ;;  %2380 = vmatpush.bf16.msrb.mxu2 %v3852_v1 }
  0x7a   : > { %3391 = vmatmul.msk.bf16.gmra.mxu2 %vm871_vm1, %v3969_v57  ;;  %2037 = vmatpush.bf16.msrb.mxu0 %v3871_v12 }
  0x7b   : > { %4033 = vmatpush.bf16.msra.mxu3 %v3871_v12 }
  0x7e   : > { %2038 = vmatpush.bf16.msrb.mxu0 %v3870_v32 }
  0x7f   : > { %4034 = vmatpush.bf16.msra.mxu3 %v3870_v32 }
  0x82   : > { %2039 = vmatpush.bf16.msrb.mxu0 %v3869_v47 }
  0x83   : > { %4035 = vmatpush.bf16.msra.mxu3 %v3869_v47 }
  0x84   : > { %3351 = vmatmul.msk.bf16.gmra.mxu0 %vm871_vm1, %v4048_v58 }
  0x86   : > { %2040 = vmatpush.bf16.msrb.mxu0 %v3868_v55 }
  0x87   : > { %4036 = vmatpush.bf16.msra.mxu3 %v3868_v55  ;;  %v3964_v55 = vunpack.c.h.b16 %v4529_v28 }
  0x89   : > { %3369 = vmatmul.msk.bf16.gmra.mxu1 %vm871_vm1, %v4369_v22  ;;  %v3847_v22 = vld [vmem:[%s5450_s7 + $0x30] sm:$0xff] }
  0x8a   : > { %3392 = vmatmul.msk.bf16.gmra.mxu2 %vm871_vm1, %v4442_v59  ;;  %2328 = vmatpush.bf16.msra.mxu1 %v3847_v22 }
  0x8b   : > { %2041 = vmatpush.bf16.msrb.mxu0 %v3867_v0  ;;  %4037 = vmatpush.bf16.msra.mxu3 %v3867_v0  ;;  %v864_v0 = vpack.c.b16 %v4547_v37, %v3964_v55 }
  0x94   : > { %3352 = vmatmul.msk.bf16.gmra.mxu0 %vm871_vm1, %v4050_v61 }
  0x99   : > { %3370 = vmatmul.msk.bf16.gmra.mxu1 %vm871_vm1, %v3966_v43  ;;  %v781_v43 = vstv %s780_s14 }
  0x9a   : > { %3393 = vmatmul.msk.bf16.gmra.mxu2 %vm871_vm1, %v4454_v62  ;;  %vm4570_vm5 = vcmp.eq.s32.totalorder %v781_v43, 1 }
  0x9b   : > { %v783_v53 = vsel %vm4570_vm5, %v753_v30, 0 }
  0x9c   : > { %v1169_v61 = vunpack.c.l.b16 %v783_v53 }
  0x9e   : > { %v1173_v12 = vpack.c.b16 %v1169_v61, %v4397_v31  ;;  %v3851_v31 = vld [vmem:[%s5450_s7 + $0x50] sm:$0xff] }
  0x9f   : > { %2381 = vmatpush.bf16.msrb.mxu2 %v3851_v31 }
  0xa4   : > { %3353 = vmatmul.msk.bf16.gmra.mxu0 %vm871_vm1, %v4052_v63 }
  0xa9   : > { %3371 = vmatmul.msk.bf16.gmra.mxu1 %vm871_vm1, %v3967_v50 }
  0xaa   : > { %3394 = vmatmul.msk.bf16.gmra.mxu2 %vm871_vm1, %v4468_v2 }
  0xad   : > { %v4473_v3 = vpop.f32.mrf.mxu2 }
  0xb1   : > { %v4479_v6 = vpop.f32.mrf.mxu0 }
  0xb4   : > { %3354 = vmatmul.msk.bf16.gmra.mxu0 %vm871_vm1, %v4054_v5 }
  0xb5   : > { %v4476_v4 = vpop.f32.mrf.mxu2 }
  0xb6   : > { %v4489_v9 = vpop.f32.mrf.mxu1 }
  0xb9   : > { %v932_v10 = vpop.f32.mrf.mxu0  ;;  %3372 = vmatmul.msk.bf16.gmra.mxu1 %vm871_vm1, %v3968_v54 }
  0xba   : > { %3395 = vmatmul.msk.bf16.gmra.mxu2 %vm871_vm1, %v4482_v7 }
  0xbd   : > { %v4487_v8 = vpop.f32.mrf.mxu2 }
  0xbe   : > { %v4497_v13 = vpop.f32.mrf.mxu1 }
  0xc1   : > { %v935_v16 = vpop.f32.mrf.mxu0 }
  0xc4   : > { %3355 = vmatmul.msk.bf16.gmra.mxu0 %vm871_vm1, %v4056_v15 }
  0xc5   : > { %v4492_v11 = vpop.f32.mrf.mxu2 }
  0xc6   : > { %v1088_v20 = vpop.f32.mrf.mxu1 }
  0xc7   : > { %v1089_v49 = vadd.f32 %v1088_v20, %v4479_v6  ;;  %v3866_v20 = vld [vmem:[%s5450_s7 + $0xc8] sm:$0xff] }
  0xc8   : > { %2042 = vmatpush.bf16.msrb.mxu0 %v3866_v20  ;;  %4038 = vmatpush.bf16.msra.mxu3 %v3866_v20  ;;  %v3886_v20 = vld [vmem:[%s5450_s7 + $0x168] sm:$0xff] }
  0xc9   : > { %v4516_v21 = vpop.f32.mrf.mxu0  ;;  %3373 = vmatmul.msk.bf16.gmra.mxu1 %vm871_vm1, %v3969_v57  ;;  %v1430_v57 = vlaneseq  ;;  %v1276_v58 = vadd.f32 %v4473_v3, %v1089_v49 }
  0xca   : > { %3396 = vmatmul.msk.bf16.gmra.mxu2 %vm871_vm1, %v4501_v17 }
  0xcb   : > { %v4610_v3 = vshrl.u32 %v1430_v57, 7 }
  0xcc   : > { %2043 = vmatpush.bf16.msrb.mxu0 %v3865_v35  ;;  %4039 = vmatpush.bf16.msra.mxu3 %v3865_v35 }
  0xcd   : > { %v4513_v19 = vpop.f32.mrf.mxu2  ;;  %v4619_v15 = vadd.s32 16, %v4610_v3  ;;  %vm1434_vm7 = vcmp.ge.s32.totalorder %v4610_v3, 1 }
  0xce   : > { %v1090_v25 = vpop.f32.mrf.mxu1  ;;  %vm4647_vm11 = vmand %vm1434_vm7, %vm4353_vm2 }
  0xcf   : > { %v1091_v45 = vadd.f32 %v1090_v25, %v932_v10  ;;  %v4061_v10 = vld [vmem:[%s4340_s26 + $0x54] sm:$0xff]   ;;  %vm1439_vm10 = vcmp.le.s32.totalorder %v4619_v15, 16  ;;  %s620_s26 = sand.u32 1, %s4158_s17  }
  0xd0   : > { %vm1445_vm12 = vmand %vm1439_vm10, %vm4353_vm2  ;;  %2134 = vmatpush.bf16.msra.mxu0 %v3888_v14  ;;  %s3308_s14 = sshll.u32 %s620_s26, 4 }
  0xd1   : > { %v4526_v27 = vpop.f32.mrf.mxu0  ;;  %v1277_v54 = vadd.f32 %v4476_v4, %v1091_v45  ;;  %s622_s25 = scalar_lea.vmem [#allocation2], %s3308_s14 }
  0xd4   : > { %3356 = vmatmul.msk.bf16.gmra.mxu0 %vm871_vm1, %v4058_v26  ;;  %v754_v26 = vld [vmem:[%s4562_s24 + $0x4] sm:$0xf] }
  0xd5   : > { %v4523_v23 = vpop.f32.mrf.mxu2  ;;  %v784_v49 = vsel %vm4570_vm5, %v754_v26, 0 }
  0xd6   : > { %v1093_v34 = vpop.f32.mrf.mxu1  ;;  %v1170_v56 = vunpack.c.l.b16 %v784_v49 }
  0xd7   : > { %v1094_v50 = vadd.f32 %v1093_v34, %v935_v16  ;;  %v755_v34 = vld [vmem:[%s4562_s24 + $0x8] sm:$0xf]  ;;  %s3058_s24 = sadd.s32 (%p4290_p5), %s4166_s19, %s3810_s27 }
  0xd8   : > { %s3811_s2 = sshll.u32 (%p4290_p5), %s3058_s24, 3 }
  0xd9   : > { %v4542_v36 = vpop.f32.mrf.mxu0  ;;  %3374 = vmatmul.msk.bf16.gmra.mxu1 %vm871_vm1, %v4442_v59  ;;  %v4597_v59 = vld [vmem:[%s5449_s6] ss:$0 sm:$0xff]  ;;  %v1278_v60 = vadd.f32 %v4487_v8, %v1094_v50  ;;  %s3060_s17 = scalar_lea.vmem (%p4290_p5), %s5454_s11, %s3811_s2 }
  0xda   : > { %3397 = vmatmul.msk.bf16.gmra.mxu2 %vm871_vm1, %v4529_v28  ;;  %v1311_v63 = vadd.f32 %v4597_v59, %v1277_v54  ;;  %v1310_v4 = vadd.f32 %v4597_v59, %v1276_v58 }
  0xdb   : > { %v1312_v5 = vadd.f32 %v4597_v59, %v1278_v60 }
  0xdc   : > { %v1371_v18 = vmul.f32 0.2, %v1311_v63  ;;  %vm1341_vm6 = vcmp.ge.f32.partialorder %v1311_v63, 0.0  ;;  %v1370_v22 = vmul.f32 0.2, %v1310_v4  ;;  %vm1340_vm8 = vcmp.ge.f32.partialorder %v1310_v4, 0.0 }
  0xdd   : > { %v4538_v33 = vpop.f32.mrf.mxu2  ;;  %v1372_v25 = vmul.f32 0.2, %v1312_v5  ;;  %vm1342_vm9 = vcmp.ge.f32.partialorder %v1312_v5, 0.0 }
  0xde   : > { %v4552_v39 = vpop.f32.mrf.mxu1  ;;  %v1401_v29 = vsel %vm1341_vm6, %v1311_v63, %v1371_v18 }
  0xdf   : > { %v1096_v32 = vadd.f32 %v4552_v39, %v4516_v21  ;;  %v1400_v39 = vsel %vm1340_vm8, %v1310_v4, %v1370_v22  ;;  %v1402_v43 = vsel %vm1342_vm9, %v1312_v5, %v1372_v25  ;;  %v1474_v45 = vsel %vm4353_vm2, %v1401_v29, 0.0  ;;  %v3845_v29 = vld [vmem:[%s5450_s7 + $0x20] sm:$0xff] }
  0xe0   : > { %v1473_v53 = vsel %vm4647_vm11, %v1400_v39, 0.0  ;;  %v1475_v46 = vsel %vm1445_vm12, %v1402_v43, 0.0 }
  0xe1   : > { %v4557_v42 = vpop.f32.mrf.mxu0  ;;  %v1279_v50 = vadd.f32 %v4492_v11, %v1096_v32  ;;  %v1504_v11 = vpack.c.bf16 %v1474_v45, %v1474_v45  ;;  %v1503_v60 = vpack.c.bf16 %v1473_v53, %v1473_v53  ;;  %v1505_v61 = vpack.c.bf16 %v1475_v46, %v1475_v46 }
  0xe3   : > { %v1313_v63 = vadd.f32 %v4597_v59, %v1279_v50 }
  0xe4   : > { %3357 = vmatmul.msk.bf16.gmra.mxu0 %vm871_vm1, %v4060_v40  ;;  %v3850_v40 = vld [vmem:[%s5450_s7 + $0x48] sm:$0xff] }
  0xe5   : > { %v4550_v38 = vpop.f32.mrf.mxu2  ;;  %2382 = vmatpush.bf16.msrb.mxu2 %v3850_v40  ;;  %vm1343_vm13 = vcmp.ge.f32.partialorder %v1313_v63, 0.0  ;;  %v3885_v40 = vld [vmem:[%s5450_s7 + $0x160] sm:$0xff] }
  0xe6   : > { %v1098_v51 = vpop.f32.mrf.mxu1 }
  0xe7   : > { %v1099_v21 = vadd.f32 %v1098_v51, %v4526_v27  ;;  %v785_v27 = vsel %vm4570_vm5, %v755_v34, 0 }
  0xe8   : > { %v1171_v57 = vunpack.c.l.b16 %v785_v27  ;;  %v3884_v27 = vld [vmem:[%s5450_s7 + $0x158] sm:$0xff] }
  0xe9   : > { %v4580_v52 = vpop.f32.mrf.mxu0  ;;  %3375 = vmatmul.msk.bf16.gmra.mxu1 %vm871_vm1, %v4454_v62  ;;  %v3846_v62 = vld [vmem:[%s5450_s7 + $0x28] sm:$0xff]  ;;  %v1280_v54 = vadd.f32 %v4513_v19, %v1099_v21  ;;  %v3887_v19 = vld [vmem:[%s5450_s7 + $0x170] sm:$0xff] }
  0xea   : > { %3398 = vmatmul.msk.bf16.gmra.mxu2 %vm871_vm1, %v1172_v41  ;;  %2329 = vmatpush.bf16.msra.mxu1 %v3846_v62  ;;  %v1174_v4 = vpack.c.b16 %v1171_v57, %v1170_v56  ;;  %v3883_v56 = vld [vmem:[%s5450_s7 + $0x150] sm:$0xff] }
  0xeb   : > { %v1314_v62 = vadd.f32 %v4597_v59, %v1280_v54  ;;  %2135 = vmatpush.bf16.msra.mxu0 %v3887_v19 }
  0xed   : > { %v4577_v48 = vpop.f32.mrf.mxu2  ;;  %v1374_v18 = vmul.f32 0.2, %v1314_v62  ;;  %vm1344_vm14 = vcmp.ge.f32.partialorder %v1314_v62, 0.0 }
  0xee   : > { %v1100_v6 = vpop.f32.mrf.mxu1  ;;  %2330 = vmatpush.bf16.msra.mxu1 %v3845_v29 }
  0xef   : > { %v1101_v30 = vadd.f32 %v1100_v6, %v4542_v36  ;;  %v3849_v36 = vld [vmem:[%s5450_s7 + $0x40] sm:$0xff]  ;;  %2136 = vmatpush.bf16.msra.mxu0 %v3886_v20  ;;  %v1404_v34 = vsel %vm1344_vm14, %v1314_v62, %v1374_v18 }
  0xf0   : > { %2383 = vmatpush.bf16.msrb.mxu2 %v3849_v36  ;;  %v1507_v45 = vpack.c.bf16 %v1404_v34, %v1404_v34 }
  0xf1   : > { %v4621_v16 = vpop.f32.mrf.mxu0  ;;  %v1281_v58 = vadd.f32 %v4523_v23, %v1101_v30  ;;  %v1553_v23 = vunpack.c.l.b16 %v1503_v60 }
  0xf3   : > { %v1315_v5 = vadd.f32 %v4597_v59, %v1281_v58  ;;  %2137 = vmatpush.bf16.msra.mxu0 %v3885_v40 }
  0xf4   : > { %3358 = vmatmul.msk.bf16.gmra.mxu0 %vm871_vm1, %v4061_v10  ;;  %v1603_v10 = vunpack.c.l.b16 %v1505_v61 }
  0xf5   : > { %v4614_v8 = vpop.f32.mrf.mxu2  ;;  %v1375_v22 = vmul.f32 0.2, %v1315_v5  ;;  %vm1345_vm15 = vcmp.ge.f32.partialorder %v1315_v5, 0.0 }
  0xf6   : > { %v1103_v44 = vpop.f32.mrf.mxu1  ;;  %v4703_v32 = vpack.c.b16 %v1603_v10, %v1603_v10 }
  0xf7   : > { %v1104_v26 = vadd.f32 %v1103_v44, %v4557_v42  ;;  %v1405_v39 = vsel %vm1345_vm15, %v1315_v5, %v1375_v22  ;;  %2138 = vmatpush.bf16.msra.mxu0 %v3884_v27 }
  0xf8   : > { %v1632_v30 = vshll.u32 %v4703_v32, 16 }
  0xf9   : > { %v4659_v47 = vpop.f32.mrf.mxu0  ;;  %3376 = vmatmul.msk.bf16.gmra.mxu1 %vm871_vm1, %v4468_v2  ;;  %v1554_v2 = vunpack.c.l.b16 %v1504_v11 }
  0xfa   : > { %3399 = vmatmul.msk.bf16.gmra.mxu2 %vm871_vm1, %v1173_v12  ;;  %v1373_v12 = vmul.f32 0.2, %v1313_v63  ;;  %v1634_v54 = vrot.slane %v1632_v30, 1 }
  0xfb   : > { %v4693_v31 = vpack.c.b16 %v1554_v2, %v1553_v23  ;;  %2139 = vmatpush.bf16.msra.mxu0 %v3883_v56  ;;  %v3882_v23 = vld [vmem:[%s5450_s7 + $0x148] sm:$0xff] }
  0xfc   : > { %v1403_v25 = vsel %vm1343_vm13, %v1313_v63, %v1373_v12 }
  0xfd   : > { %v4666_v51 = vpop.f32.mrf.mxu2  ;;  %v1627_v21 = vshll.u32 %v4693_v31, 16  ;;  %v1476_v42 = vsel %vm1434_vm7, %v1403_v25, 0.0  ;;  %v1625_v46 = vshrl.u32 %v4693_v31, 16  ;;  %v3881_v25 = vld [vmem:[%s5450_s7 + $0x140] sm:$0xff] }
  0xfe   : > { %v1105_v1 = vpop.f32.mrf.mxu1  ;;  %v1506_v50 = vpack.c.bf16 %v1476_v42, %v1476_v42 }
  0xff   : > { %v1106_v35 = vadd.f32 %v1105_v1, %v4580_v52  ;;  %v1282_v52 = vadd.f32 %v4538_v33, %v1104_v26  ;;  %v1629_v14 = vrot.slane %v1627_v21, 1  ;;  %v1478_v33 = vsel %vm1439_vm10, %v1405_v39, 0.0  ;;  %2140 = vmatpush.bf16.msra.mxu0 %v3882_v23  ;;  %v3841_v26 = vld [vmem:[%s5450_s7] sm:$0xff] }
 0x100   : > { %v1508_v55 = vpack.c.bf16 %v1478_v33, %v1478_v33  ;;  %v1555_v57 = vunpack.c.l.b16 %v1506_v50 }
 0x101   : > { %v4688_v6 = vpop.f32.mrf.mxu0  ;;  %v1283_v49 = vadd.f32 %v4550_v38, %v1106_v35  ;;  %v1556_v38 = vunpack.c.l.b16 %v1507_v45  ;;  %v1630_v60 = vor.u32 %v1629_v14, %v1625_v46 }
 0x102   : > { %v1604_v5 = vunpack.c.l.b16 %v1508_v55 }
 0x103   : > { %v1317_v11 = vadd.f32 %v4597_v59, %v1283_v49  ;;  %v4744_v19 = vpack.c.b16 %v1556_v38, %v1555_v57  ;;  %2141 = vmatpush.bf16.msra.mxu0 %v3881_v25 }
 0x104   : > { %3359 = vmatmul.msk.bf16.gmra.mxu0 %vm871_vm1, %v864_v0  ;;  %v1635_v0 = vsel %vm1623_vm0, %v1630_v60, %v1634_v54  ;;  %v4756_v22 = vpack.c.b16 %v1604_v5, %v1604_v5 }
 0x105   : > { %v4695_v37 = vpop.f32.mrf.mxu2  ;;  %v1377_v1 = vmul.f32 0.2, %v1317_v11  ;;  %vm1347_vm4 = vcmp.ge.f32.partialorder %v1317_v11, 0.0  ;;  %v1639_v42 = vshll.u32 %v4744_v19, 16  ;;  %v1637_v14 = vshrl.u32 %v4744_v19, 16 }
 0x106   : > { %v1108_v41 = vpop.f32.mrf.mxu1 }
 0x107   : > { %v1109_v43 = vadd.f32 %v1108_v41, %v4621_v16  ;;  %v3844_v16 = vld [vmem:[%s5450_s7 + $0x18] sm:$0xff] }
 0x108   : > { %2331 = vmatpush.bf16.msra.mxu1 %v3844_v16  ;;  %v1641_v16 = vrot.slane %v1639_v42, 1 }
 0x109   : > { %v4713_v44 = vpop.f32.mrf.mxu0  ;;  %3377 = vmatmul.msk.bf16.gmra.mxu1 %vm871_vm1, %v4482_v7  ;;  %v1284_v36 = vadd.f32 %v4577_v48, %v1109_v43  ;;  %v1316_v7 = vadd.f32 %v4597_v59, %v1282_v52  ;;  %v3843_v48 = vld [vmem:[%s5450_s7 + $0x10] sm:$0xff]  ;;  %v1644_v52 = vshll.u32 %v4756_v22, 16 }
 0x10a   : > { %3400 = vmatmul.msk.bf16.gmra.mxu2 %vm871_vm1, %v1174_v4  ;;  %v1642_v55 = vor.u32 %v1641_v16, %v1637_v14 }
 0x10b   : > { %v1318_v61 = vadd.f32 %v4597_v59, %v1284_v36  ;;  %v1376_v2 = vmul.f32 0.2, %v1316_v7  ;;  %vm1346_vm2 = vcmp.ge.f32.partialorder %v1316_v7, 0.0  ;;  %v1646_v33 = vrot.slane %v1644_v52, 1 }
 0x10c   : > { %2332 = vmatpush.bf16.msra.mxu1 %v3843_v48 }
 0x10d   : > { %v4730_v53 = vpop.f32.mrf.mxu2  ;;  %v1378_v10 = vmul.f32 0.2, %v1318_v61  ;;  %v1406_v18 = vsel %vm1346_vm2, %v1316_v7, %v1376_v2  ;;  %vm1348_vm5 = vcmp.ge.f32.partialorder %v1318_v61, 0.0  ;;  %v4785_v60 = vsel %vm1623_vm0, %v1642_v55, %v1646_v33 }
 0x10e   : > { %v1110_v58 = vpop.f32.mrf.mxu1  ;;  %v1479_v35 = vsel %vm1434_vm7, %v1406_v18, 0.0 }
 0x10f   : > { %v1111_v63 = vadd.f32 %v1110_v58, %v4659_v47  ;;  %v3842_v47 = vld [vmem:[%s5450_s7 + $0x8] sm:$0xff]  ;;  %v1408_v40 = vsel %vm1348_vm5, %v1318_v61, %v1378_v10  ;;  %v1509_v30 = vpack.c.bf16 %v1479_v35, %v1479_v35 }
 0x110   : > { %2333 = vmatpush.bf16.msra.mxu1 %v3842_v47  ;;  %v1481_v49 = vsel %vm1439_vm10, %v1408_v40, 0.0 }
 0x111   : > { %v4742_v62 = vpop.f32.mrf.mxu0  ;;  %v1285_v4 = vadd.f32 %v4614_v8, %v1111_v63  ;;  %v1407_v8 = vsel %vm1347_vm4, %v1317_v11, %v1377_v1  ;;  %v1511_v36 = vpack.c.bf16 %v1481_v49, %v1481_v49 }
 0x112   : > { %v1510_v39 = vpack.c.bf16 %v1407_v8, %v1407_v8 }
 0x113   : > { %v1319_v12 = vadd.f32 %v4597_v59, %v1285_v4  ;;  %v1605_v61 = vunpack.c.l.b16 %v1511_v36 }
 0x114   : > { %2044 = vmatmul.bf16.vlgmr.msrb.gmra.mxu0 %v4744_v19  ;;  %2334 = vmatpush.bf16.msra.mxu1 %v3841_v26  ;;  %v1558_v50 = vunpack.c.l.b16 %v1510_v39 }
 0x115   : > { %vm1349_vm6 = vcmp.ge.f32.partialorder %v1319_v12, 0.0  ;;  %v1379_v20 = vmul.f32 0.2, %v1319_v12  ;;  %v4764_v34 = vpop.f32.mrf.mxu2  ;;  %v4792_v4 = vpack.c.b16 %v1605_v61, %v1605_v61 }
 0x116   : > { %v1113_v29 = vpop.f32.mrf.mxu1 }
 0x117   : > { %v1114_v41 = vadd.f32 %v1113_v29, %v4688_v6  ;;  %v1409_v43 = vsel %vm1349_vm6, %v1319_v12, %v1379_v20  ;;  %v1656_v18 = vshll.u32 %v4792_v4, 16  ;;  %v1759_v29 = vrot.slane %v4756_v22, 1 }
 0x118   : > { %v1482_v6 = vsel %vm1434_vm7, %v1409_v43, 0.0 }
 0x119   : > { %v962_v21 = vpop.f32.mrf.mxu0  ;;  %v1286_v45 = vadd.f32 %v4666_v51, %v1114_v41  ;;  %3378 = vmatmul.msk.bf16.gmra.mxu1 %vm871_vm1, %v4501_v17  ;;  %v1557_v17 = vunpack.c.l.b16 %v1509_v30  ;;  %v1512_v38 = vpack.c.bf16 %v1482_v6, %v1482_v6  ;;  %v1658_v40 = vrot.slane %v1656_v18, 1 }
 0x11a   : > { %2384 = vmatmul.bf16.vlgmr.msrb.gmra.mxu2 %v1635_v0 }
 0x11b   : > { %v1320_v27 = vadd.f32 %v4597_v59, %v1286_v45  ;;  %v4781_v56 = vpack.c.b16 %v1558_v50, %v1557_v17  ;;  %v1559_v63 = vunpack.c.l.b16 %v1512_v38  ;;  %v3880_v17 = vld [vmem:[%s5450_s7 + $0x138] sm:$0xff] }
 0x11c   : > { %2085 = vmatpush.bf16.msrb.mxu3 %v3880_v17 }
 0x11d   : > { %vm1350_vm8 = vcmp.ge.f32.partialorder %v1320_v27, 0.0  ;;  %v1380_v51 = vmul.f32 0.2, %v1320_v27  ;;  %v1236_v57 = vpop.f32.mrf.mxu2  ;;  %v1651_v47 = vshll.u32 %v4781_v56, 16 }
 0x11e   : > { %v1115_v7 = vpop.f32.mrf.mxu1 }
 0x11f   : > { %v1410_v46 = vsel %vm1350_vm8, %v1320_v27, %v1380_v51  ;;  %v1116_v54 = vadd.f32 %v1115_v7, %v4713_v44  ;;  %v1653_v26 = vrot.slane %v1651_v47, 1  ;;  %v1761_v47 = vrot.slane %v4781_v56, 1 }
 0x120   : > { %v1513_v48 = vpack.c.bf16 %v1410_v46, %v1410_v46 }
 0x121   : > { %v965_v11 = vpop.f32.mrf.mxu0  ;;  %v1287_v58 = vadd.f32 %v4695_v37, %v1116_v54 }
 0x122   : > { %v1560_v2 = vunpack.c.l.b16 %v1513_v48 }
 0x123   : > { %v1321_v44 = vadd.f32 %v4597_v59, %v1287_v58 }
 0x124   : > { %2049 = vmatmul.bf16.gmra.mxu0 %v4781_v56  ;;  %v4790_v0 = vpack.c.b16 %v1560_v2, %v1559_v63  ;;  %v1762_v63 = vrot.slane %v4792_v4, 1 }
 0x125   : > { %vm1351_vm9 = vcmp.ge.f32.partialorder %v1321_v44, 0.0  ;;  %v1381_v1 = vmul.f32 0.2, %v1321_v44  ;;  %v1238_v8 = vpop.f32.mrf.mxu2 }
 0x126   : > { %v1118_v5 = vpop.f32.mrf.mxu1  ;;  %2054 = vmatmul.bf16.vlgmr.msra.gmra.mxu3 %v4790_v0  ;;  %v1663_v36 = vshll.u32 %v4790_v0, 16 }
 0x127   : > { %v1411_v37 = vsel %vm1351_vm9, %v1321_v44, %v1381_v1  ;;  %v1119_v23 = vadd.f32 %v1118_v5, %v4742_v62  ;;  %v1649_v62 = vshrl.u32 %v4781_v56, 16  ;;  %v1661_v44 = vshrl.u32 %v4790_v0, 16 }
 0x128   : > { %v1484_v20 = vsel %vm1439_vm10, %v1411_v37, 0.0  ;;  %v1665_v58 = vrot.slane %v1663_v36, 1 }
 0x129   : > { %v967_v10 = vpop.f32.mrf.mxu0  ;;  %v1288_v12 = vadd.f32 %v4730_v53, %v1119_v23  ;;  %3379 = vmatmul.msk.bf16.gmra.mxu1 %vm871_vm1, %v4529_v28  ;;  %v1514_v53 = vpack.c.bf16 %v1484_v20, %v1484_v20  ;;  %v1758_v28 = vrot.slane %v4744_v19, 1  ;;  %v1654_v39 = vor.u32 %v1653_v26, %v1649_v62 }
 0x12a   : > { %2389 = vmatmul.bf16.gmra.mxu2 %v4785_v60  ;;  %vm1754_vm1 = vcmask 1046528  }
 0x12b   : > { %v1322_v25 = vadd.f32 %v4597_v59, %v1288_v12  ;;  %v4809_v52 = vsel %vm1754_vm1, %v1758_v28, %v1759_v29  ;;  %v4812_v22 = vsel %vm1623_vm0, %v1654_v39, %v1658_v40  ;;  %v1606_v30 = vunpack.c.l.b16 %v1514_v53  ;;  %v3879_v29 = vld [vmem:[%s5450_s7 + $0x130] sm:$0xff] }
 0x12c   : > { %v1666_v12 = vor.u32 %v1665_v58, %v1661_v44  ;;  %v4837_v4 = vsel %vm1754_vm1, %v1761_v47, %v1762_v63  ;;  %2086 = vmatpush.bf16.msrb.mxu3 %v3879_v29 }
 0x12d   : > { %vm1352_vm11 = vcmp.ge.f32.partialorder %v1322_v25, 0.0  ;;  %v1382_v35 = vmul.f32 0.2, %v1322_v25  ;;  %v1241_v27 = vpop.f32.mrf.mxu2  ;;  %v4819_v16 = vpack.c.b16 %v1606_v30, %v1606_v30 }
 0x12e   : > { %v1120_v41 = vpop.f32.mrf.mxu1 }
 0x12f   : > { %v1121_v42 = vadd.f32 %v1120_v41, %v962_v21  ;;  %v1412_v43 = vsel %vm1352_vm11, %v1322_v25, %v1382_v35  ;;  %v1668_v46 = vshll.u32 %v4819_v16, 16 }
 0x130   : > { %v1485_v21 = vsel %vm1434_vm7, %v1412_v43, 0.0 }
 0x131   : > { %v1289_v45 = vadd.f32 %v4764_v34, %v1121_v42  ;;  %v970_v49 = vpop.f32.mrf.mxu0  ;;  %v1515_v50 = vpack.c.bf16 %v1485_v21, %v1485_v21 }
 0x133   : > { %v1323_v6 = vadd.f32 %v4597_v59, %v1289_v45  ;;  %v1561_v54 = vunpack.c.l.b16 %v1515_v50 }
 0x134   : > { %2142 = vmatmul.bf16.vlgmr.msra.gmra.mxu0 %v4809_v52 }
 0x135   : > { %vm1353_vm12 = vcmp.ge.f32.partialorder %v1323_v6, 0.0  ;;  %v1383_v34 = vmul.f32 0.2, %v1323_v6  ;;  %v1243_v1 = vpop.f32.mrf.mxu2 }
 0x136   : > { %v1123_v14 = vpop.f32.mrf.mxu1 }
 0x137   : > { %v1413_v51 = vsel %vm1353_vm12, %v1323_v6, %v1383_v34  ;;  %v1124_v33 = vadd.f32 %v1123_v14, %v965_v11  ;;  %v1765_v34 = vrot.slane %v4819_v16, 1 }
 0x138   : > { %v1516_v38 = vpack.c.bf16 %v1413_v51, %v1413_v51 }
 0x139   : > { %v1290_v7 = vadd.f32 %v1236_v57, %v1124_v33  ;;  %2335 = vmatmul.bf16.vlgmr.msra.gmra.mxu1 %v4693_v31  ;;  %v972_v11 = vpop.f32.mrf.mxu0  ;;  %v1670_v57 = vrot.slane %v1668_v46, 1 }
 0x13a   : > { %2394 = vmatmul.bf16.gmra.mxu2 %v4812_v22  ;;  %v1562_v55 = vunpack.c.l.b16 %v1516_v38  ;;  %v3878_v38 = vld [vmem:[%s5450_s7 + $0x128] sm:$0xff] }
 0x13b   : > { %v1324_v48 = vadd.f32 %v4597_v59, %v1290_v7  ;;  %v4840_v25 = vsel %vm1623_vm0, %v1666_v12, %v1670_v57  ;;  %2087 = vmatpush.bf16.msrb.mxu3 %v3878_v38 }
 0x13c   : > { %v4828_v61 = vpack.c.b16 %v1562_v55, %v1561_v54 }
 0x13d   : > { %vm1354_vm13 = vcmp.ge.f32.partialorder %v1324_v48, 0.0  ;;  %v1384_v2 = vmul.f32 0.2, %v1324_v48  ;;  %v1246_v39 = vpop.f32.mrf.mxu2 }
 0x13e   : > { %v1125_v5 = vpop.f32.mrf.mxu1  ;;  %2059 = vmatmul.bf16.gmra.mxu3 %v4828_v61  ;;  %v1675_v42 = vshll.u32 %v4828_v61, 16 }
 0x13f   : > { %v1414_v37 = vsel %vm1354_vm13, %v1324_v48, %v1384_v2  ;;  %v1126_v23 = vadd.f32 %v1125_v5, %v967_v10 }
 0x140   : > { %v1487_v18 = vsel %vm1439_vm10, %v1414_v37, 0.0  ;;  %v1677_v6 = vrot.slane %v1675_v42, 1 }
 0x141   : > { %v1291_v20 = vadd.f32 %v1238_v8, %v1126_v23  ;;  %v1517_v26 = vpack.c.bf16 %v1487_v18, %v1487_v18  ;;  %v975_v40 = vpop.f32.mrf.mxu0 }
 0x143   : > { %v1325_v10 = vadd.f32 %v4597_v59, %v1291_v20  ;;  %v1607_v62 = vunpack.c.l.b16 %v1517_v26 }
 0x144   : > { %2147 = vmatmul.bf16.gmra.mxu0 %v4837_v4 }
 0x145   : > { %vm1355_vm14 = vcmp.ge.f32.partialorder %v1325_v10, 0.0  ;;  %v1385_v8 = vmul.f32 0.2, %v1325_v10  ;;  %v4848_v35 = vpack.c.b16 %v1607_v62, %v1607_v62 }
 0x146   : > { %v1128_v53 = vpop.f32.mrf.mxu1 }
 0x147   : > { %v1129_v41 = vadd.f32 %v1128_v53, %v970_v49  ;;  %v1415_v28 = vsel %vm1355_vm14, %v1325_v10, %v1385_v8  ;;  %v1680_v45 = vshll.u32 %v4848_v35, 16  ;;  %v1673_v49 = vshrl.u32 %v4828_v61, 16  ;;  %v3877_v10 = vld [vmem:[%s5450_s7 + $0x120] sm:$0xff] }
 0x148   : > { %v1488_v30 = vsel %vm1434_vm7, %v1415_v28, 0.0  ;;  %v1768_v62 = vrot.slane %v4848_v35, 1  ;;  %2088 = vmatpush.bf16.msrb.mxu3 %v3877_v10  ;;  %v1767_v28 = vrot.slane %v4828_v61, 1  ;;  %v3909_v10 = vld [vmem:[%s5450_s7 + $0x220] sm:$0xff] }
 0x149   : > { %v1292_v43 = vadd.f32 %v1241_v27, %v1129_v41  ;;  %2340 = vmatmul.bf16.gmra.mxu1 %v4744_v19  ;;  %v1682_v14 = vrot.slane %v1680_v45, 1  ;;  %v1518_v51 = vpack.c.bf16 %v1488_v30, %v1488_v30  ;;  %v1764_v19 = vrot.slane %v4790_v0, 1  ;;  %v977_v46 = vpop.f32.mrf.mxu0 }
 0x14a   : > { %2399 = vmatmul.bf16.gmra.mxu2 %v4840_v25  ;;  %v1678_v17 = vor.u32 %v1677_v6, %v1673_v49 }
 0x14b   : > { %v1326_v21 = vadd.f32 %v4597_v59, %v1292_v43  ;;  %v4863_v16 = vsel %vm1754_vm1, %v1764_v19, %v1765_v34  ;;  %v1563_v48 = vunpack.c.l.b16 %v1518_v51  ;;  %v3912_v51 = vld [vmem:[%s5450_s7 + $0x238] sm:$0xff] }
 0x14c   : > { %v4866_v55 = vsel %vm1623_vm0, %v1678_v17, %v1682_v14  ;;  %2765 = vmatpush.bf16.msra.mxu2 %v3912_v51  ;;  %v3907_v51 = vld [vmem:[%s5450_s7 + $0x210] sm:$0xff] }
 0x14d   : > { %vm1356_vm15 = vcmp.ge.f32.partialorder %v1326_v21, 0.0  ;;  %v1386_v50 = vmul.f32 0.2, %v1326_v21 }
 0x14e   : > { %v1130_v33 = vpop.f32.mrf.mxu1 }
 0x14f   : > { %v1416_v27 = vsel %vm1356_vm15, %v1326_v21, %v1386_v50  ;;  %v1131_v36 = vadd.f32 %v1130_v33, %v972_v11  ;;  %v1248_v11 = vpop.f32.mrf.mxu2  ;;  %v4886_v21 = vsel %vm1754_vm1, %v1767_v28, %v1768_v62  ;;  %v3908_v28 = vld [vmem:[%s5450_s7 + $0x218] sm:$0xff] }
 0x150   : > { %v1519_v7 = vpack.c.bf16 %v1416_v27, %v1416_v27 }
 0x151   : > { %v1293_v54 = vadd.f32 %v1243_v1, %v1131_v36  ;;  %v980_v18 = vpop.f32.mrf.mxu0 }
 0x152   : > { %v1564_v58 = vunpack.c.l.b16 %v1519_v7  ;;  %v3876_v7 = vld [vmem:[%s5450_s7 + $0x118] sm:$0xff] }
 0x153   : > { %v1327_v63 = vadd.f32 %v4597_v59, %v1293_v54  ;;  %v3911_v54 = vld [vmem:[%s5450_s7 + $0x230] sm:$0xff]  ;;  %2089 = vmatpush.bf16.msrb.mxu3 %v3876_v7 }
 0x154   : > { %2152 = vmatmul.bf16.gmra.mxu0 %v4863_v16  ;;  %v4871_v2 = vpack.c.b16 %v1564_v58, %v1563_v48  ;;  %2766 = vmatpush.bf16.msra.mxu2 %v3911_v54 }
 0x155   : > { %vm1357_vm2 = vcmp.ge.f32.partialorder %v1327_v63, 0.0  ;;  %v1387_v44 = vmul.f32 0.2, %v1327_v63 }
 0x156   : > { %v1133_v57 = vpop.f32.mrf.mxu1  ;;  %2064 = vmatmul.bf16.gmra.mxu3 %v4871_v2  ;;  %v1687_v12 = vshll.u32 %v4871_v2, 16 }
 0x157   : > { %v1417_v1 = vsel %vm1357_vm2, %v1327_v63, %v1387_v44  ;;  %v1134_v5 = vadd.f32 %v1133_v57, %v975_v40  ;;  %v1251_v29 = vpop.f32.mrf.mxu2  ;;  %v3910_v57 = vld [vmem:[%s5450_s7 + $0x228] sm:$0xff] }
 0x158   : > { %v1490_v37 = vsel %vm1439_vm10, %v1417_v1, 0.0  ;;  %v1689_v53 = vrot.slane %v1687_v12, 1  ;;  %2767 = vmatpush.bf16.msra.mxu2 %v3910_v57 }
 0x159   : > { %v1294_v23 = vadd.f32 %v1246_v39, %v1134_v5  ;;  %2345 = vmatmul.bf16.gmra.mxu1 %v4781_v56  ;;  %v1520_v47 = vpack.c.bf16 %v1490_v37, %v1490_v37  ;;  %v1685_v39 = vshrl.u32 %v4871_v2, 16  ;;  %v982_v14 = vpop.f32.mrf.mxu0 }
 0x15a   : > { %2404 = vmatmul.bf16.gmra.mxu2 %v4866_v55 }
 0x15b   : > { %v1328_v20 = vadd.f32 %v4597_v59, %v1294_v23  ;;  %v1608_v26 = vunpack.c.l.b16 %v1520_v47  ;;  %v1690_v6 = vor.u32 %v1689_v53, %v1685_v39 }
 0x15c   : > { %2768 = vmatpush.bf16.msra.mxu2 %v3909_v10 }
 0x15d   : > { %vm1358_vm4 = vcmp.ge.f32.partialorder %v1328_v20, 0.0  ;;  %v1388_v8 = vmul.f32 0.2, %v1328_v20  ;;  %v1618_v40 = vpack.c.b16 %v1608_v26, %v1608_v26 }
 0x15e   : > { %v1135_v41 = vpop.f32.mrf.mxu1 }
 0x15f   : > { %v1136_v42 = vadd.f32 %v1135_v41, %v977_v46  ;;  %v1692_v43 = vshll.u32 %v1618_v40, 16  ;;  %v1418_v45 = vsel %vm1358_vm4, %v1328_v20, %v1388_v8  ;;  %v1253_v36 = vpop.f32.mrf.mxu2  ;;  %v1771_v5 = vrot.slane %v1618_v40, 1 }
 0x160   : > { %v1491_v35 = vsel %vm1434_vm7, %v1418_v45, 0.0  ;;  %2769 = vmatpush.bf16.msra.mxu2 %v3908_v28 }
 0x161   : > { %v1295_v30 = vadd.f32 %v1248_v11, %v1136_v42  ;;  %v1694_v34 = vrot.slane %v1692_v43, 1  ;;  %v1521_v27 = vpack.c.bf16 %v1491_v35, %v1491_v35  ;;  %v985_v37 = vpop.f32.mrf.mxu0  ;;  %v3875_v42 = vld [vmem:[%s5450_s7 + $0x110] sm:$0xff] }
 0x162   : > { %2090 = vmatpush.bf16.msrb.mxu3 %v3875_v42 }
 0x163   : > { %v1329_v50 = vadd.f32 %v4597_v59, %v1295_v30  ;;  %v4893_v49 = vsel %vm1623_vm0, %v1690_v6, %v1694_v34  ;;  %v1565_v58 = vunpack.c.l.b16 %v1521_v27 }
 0x164   : > { %2157 = vmatmul.bf16.gmra.mxu0 %v4886_v21  ;;  %2770 = vmatpush.bf16.msra.mxu2 %v3907_v51 }
 0x165   : > { %vm1359_vm5 = vcmp.ge.f32.partialorder %v1329_v50, 0.0  ;;  %v1389_v33 = vmul.f32 0.2, %v1329_v50 }
 0x166   : > { %v1138_v19 = vpop.f32.mrf.mxu1 }
 0x167   : > { %v1419_v17 = vsel %vm1359_vm5, %v1329_v50, %v1389_v33  ;;  %v1139_v38 = vadd.f32 %v1138_v19, %v980_v18  ;;  %v1770_v18 = vrot.slane %v4871_v2, 1  ;;  %v1256_v20 = vpop.f32.mrf.mxu2  ;;  %v3904_v19 = vld [vmem:[%s5450_s7 + $0x1f8] sm:$0xff]  ;;  %vm1454_vm5 = vmand %vm1439_vm10, %vm4375_vm3 }
 0x168   : > { %v1522_v46 = vpack.c.bf16 %v1419_v17, %v1419_v17  ;;  %2716 = vmatpush.bf16.msrb.mxu1 %v3904_v19  ;;  %v3892_v19 = vld [vmem:[%s5450_s7 + $0x198] sm:$0xff] }
 0x169   : > { %v1296_v48 = vadd.f32 %v1251_v29, %v1139_v38  ;;  %2350 = vmatmul.bf16.gmra.mxu1 %v4790_v0  ;;  %v4920_v62 = vsel %vm1754_vm1, %v1770_v18, %v1771_v5  ;;  %v987_v50 = vpop.f32.mrf.mxu0  ;;  %v3896_v38 = vld [vmem:[%s5450_s7 + $0x1b8] sm:$0xff]  ;;  %v3895_v5 = vld [vmem:[%s5450_s7 + $0x1b0] sm:$0xff] }
 0x16a   : > { %2409 = vmatmul.bf16.gmra.mxu2 %v4893_v49  ;;  %v1566_v11 = vunpack.c.l.b16 %v1522_v46  ;;  %2667 = vmatpush.bf16.msrb.mxu0 %v3896_v38 }
 0x16b   : > { %v1330_v63 = vadd.f32 %v4597_v59, %v1296_v48  ;;  %v3906_v48 = vld [vmem:[%s5450_s7 + $0x208] sm:$0xff] }
 0x16c   : > { %v4907_v44 = vpack.c.b16 %v1566_v11, %v1565_v58  ;;  %2771 = vmatpush.bf16.msra.mxu2 %v3906_v48 }
 0x16d   : > { %vm1360_vm6 = vcmp.ge.f32.partialorder %v1330_v63, 0.0  ;;  %v1390_v1 = vmul.f32 0.2, %v1330_v63 }
 0x16e   : > { %v1140_v23 = vpop.f32.mrf.mxu1  ;;  %2069 = vmatmul.bf16.gmra.mxu3 %v4907_v44  ;;  %v1699_v40 = vshll.u32 %v4907_v44, 16  ;;  %v1697_v34 = vshrl.u32 %v4907_v44, 16  ;;  %2668 = vmatpush.bf16.msrb.mxu0 %v3895_v5 }
 0x16f   : > { %v1420_v47 = vsel %vm1360_vm6, %v1330_v63, %v1390_v1  ;;  %v1141_v12 = vadd.f32 %v1140_v23, %v982_v14  ;;  %v1258_v17 = vpop.f32.mrf.mxu2  ;;  %v3903_v63 = vld [vmem:[%s5450_s7 + $0x1f0] sm:$0xff]  ;;  %vm1452_vm6 = vmand %vm1434_vm7, %vm4375_vm3 }
 0x170   : > { %v1493_v26 = vsel %vm1439_vm10, %v1420_v47, 0.0  ;;  %v1701_v45 = vrot.slane %v1699_v40, 1  ;;  %v1773_v47 = vrot.slane %v4907_v44, 1  ;;  %2717 = vmatpush.bf16.msrb.mxu1 %v3903_v63 }
 0x171   : > { %v1297_v29 = vadd.f32 %v1253_v36, %v1141_v12  ;;  %v1523_v8 = vpack.c.bf16 %v1493_v26, %v1493_v26  ;;  %v3874_v12 = vld [vmem:[%s5450_s7 + $0x108] sm:$0xff]  ;;  %v990_v40 = vpop.f32.mrf.mxu0 }
 0x172   : > { %v1702_v27 = vor.u32 %v1701_v45, %v1697_v34  ;;  %2091 = vmatpush.bf16.msrb.mxu3 %v3874_v12  ;;  %v3901_v45 = vld [vmem:[%s5450_s7 + $0x1e0] sm:$0xff] }
 0x173   : > { %v1331_v53 = vadd.f32 %v4597_v59, %v1297_v29  ;;  %v1609_v41 = vunpack.c.l.b16 %v1523_v8  ;;  %v3902_v29 = vld [vmem:[%s5450_s7 + $0x1e8] sm:$0xff] }
 0x174   : > { %2162 = vmatmul.bf16.gmra.mxu0 %v4920_v62  ;;  %2718 = vmatpush.bf16.msrb.mxu1 %v3902_v29 }
 0x175   : > { %vm1361_vm8 = vcmp.ge.f32.partialorder %v1331_v53, 0.0  ;;  %v1391_v39 = vmul.f32 0.2, %v1331_v53  ;;  %v1619_v43 = vpack.c.b16 %v1609_v41, %v1609_v41  ;;  %v3894_v41 = vld [vmem:[%s5450_s7 + $0x1a8] sm:$0xff] }
 0x176   : > { %v1143_v30 = vpop.f32.mrf.mxu1  ;;  %2669 = vmatpush.bf16.msrb.mxu0 %v3894_v41  ;;  %v5022_v41 = vld [vmem:[%s5449_s6] ss:$0 sm:$0xff] }
 0x177   : > { %v1144_v6 = vadd.f32 %v1143_v30, %v985_v37  ;;  %v1704_v35 = vshll.u32 %v1619_v43, 16  ;;  %v1421_v14 = vsel %vm1361_vm8, %v1331_v53, %v1391_v39  ;;  %v1774_v11 = vrot.slane %v1619_v43, 1  ;;  %v1261_v28 = vpop.f32.mrf.mxu2 }
 0x178   : > { %v1494_v7 = vsel %vm1434_vm7, %v1421_v14, 0.0  ;;  %2719 = vmatpush.bf16.msrb.mxu1 %v3901_v45  ;;  %v3897_v45 = vld [vmem:[%s5450_s7 + $0x1c0] sm:$0xff] }
 0x179   : > { %v1298_v33 = vadd.f32 %v1256_v20, %v1144_v6  ;;  %2355 = vmatmul.bf16.gmra.mxu1 %v4828_v61  ;;  %v1706_v36 = vrot.slane %v1704_v35, 1  ;;  %v1524_v57 = vpack.c.bf16 %v1494_v7, %v1494_v7  ;;  %v3905_v20 = vld [vmem:[%s5450_s7 + $0x200] sm:$0xff]  ;;  %v4966_v10 = vsel %vm1754_vm1, %v1773_v47, %v1774_v11  ;;  %v992_v7 = vpop.f32.mrf.mxu0  ;;  %v3899_v11 = vld [vmem:[%s5450_s7 + $0x1d0] sm:$0xff] }
 0x17a   : > { %2772 = vmatpush.bf16.msra.mxu2 %v3905_v20  ;;  %v3893_v6 = vld [vmem:[%s5450_s7 + $0x1a0] sm:$0xff] }
 0x17b   : > { %v1332_v46 = vadd.f32 %v4597_v59, %v1298_v33  ;;  %v4946_v54 = vsel %vm1623_vm0, %v1702_v27, %v1706_v36  ;;  %v1567_v8 = vunpack.c.l.b16 %v1524_v57  ;;  %2670 = vmatpush.bf16.msrb.mxu0 %v3893_v6  ;;  %v3900_v27 = vld [vmem:[%s5450_s7 + $0x1d8] sm:$0xff]  ;;  %v3873_v36 = vld [vmem:[%s5450_s7 + $0x100] sm:$0xff] }
 0x17c   : > { %2414 = vmatmul.bf16.gmra.mxu2 %v4946_v54  ;;  %2720 = vmatpush.bf16.msrb.mxu1 %v3900_v27 }
 0x17d   : > { %vm1362_vm9 = vcmp.ge.f32.partialorder %v1332_v46, 0.0  ;;  %v1392_v58 = vmul.f32 0.2, %v1332_v46  ;;  %2092 = vmatpush.bf16.msrb.mxu3 %v3873_v36 }
 0x17e   : > { %v1145_v1 = vpop.f32.mrf.mxu1 }
 0x17f   : > { %v1422_v37 = vsel %vm1362_vm9, %v1332_v46, %v1392_v58  ;;  %v1146_v23 = vadd.f32 %v1145_v1, %v987_v50  ;;  %2671 = vmatpush.bf16.msrb.mxu0 %v3892_v19  ;;  %v1263_v63 = vpop.f32.mrf.mxu2 }
 0x180   : > { %v1525_v18 = vpack.c.bf16 %v1422_v37, %v1422_v37  ;;  %2721 = vmatpush.bf16.msrb.mxu1 %v3899_v11 }
 0x181   : > { %v1299_v26 = vadd.f32 %v1258_v17, %v1146_v23 }
 0x182   : > { %v1568_v53 = vunpack.c.l.b16 %v1525_v18 }
 0x183   : > { %v1333_v42 = vadd.f32 %v4597_v59, %v1299_v26 }
 0x184   : > { %2167 = vmatmul.bf16.gmra.mxu0 %v4966_v10  ;;  %v4976_v39 = vpack.c.b16 %v1568_v53, %v1567_v8  ;;  %v3898_v8 = vld [vmem:[%s5450_s7 + $0x1c8] sm:$0xff] }
 0x185   : > { %vm1363_vm11 = vcmp.ge.f32.partialorder %v1333_v42, 0.0  ;;  %v1393_v43 = vmul.f32 0.2, %v1333_v42  ;;  %2722 = vmatpush.bf16.msrb.mxu1 %v3898_v8 }
 0x186   : > { %v1148_v30 = vpop.f32.mrf.mxu1  ;;  %2074 = vmatmul.bf16.gmra.mxu3 %v4976_v39  ;;  %v1711_v33 = vshll.u32 %v4976_v39, 16  ;;  %v1709_v1 = vshrl.u32 %v4976_v39, 16  ;;  %v1776_v23 = vrot.slane %v4976_v39, 1 }
 0x187   : > { %v1423_v34 = vsel %vm1363_vm11, %v1333_v42, %v1393_v43  ;;  %v1149_v35 = vadd.f32 %v1148_v30, %v990_v40  ;;  %v3890_v40 = vld [vmem:[%s5450_s7 + $0x188] sm:$0xff]  ;;  %v995_v30 = vpop.f32.mrf.mxu0 }
 0x188   : > { %v1496_v50 = vsel %vm1439_vm10, %v1423_v34, 0.0  ;;  %v1713_v58 = vrot.slane %v1711_v33, 1  ;;  %v1266_v33 = vpop.f32.mrf.mxu2 }
 0x189   : > { %v1300_v14 = vadd.f32 %v1261_v28, %v1149_v35  ;;  %2360 = vmatmul.bf16.gmra.mxu1 %v4871_v2  ;;  %v1526_v51 = vpack.c.bf16 %v1496_v50, %v1496_v50  ;;  %v3889_v35 = vld [vmem:[%s5450_s7 + $0x180] sm:$0xff] }
 0x18a   : > { %v1714_v20 = vor.u32 %v1713_v58, %v1709_v1  ;;  %2723 = vmatpush.bf16.msrb.mxu1 %v3897_v45 }
 0x18b   : > { %v1334_v17 = vadd.f32 %v4597_v59, %v1300_v14  ;;  %v1610_v38 = vunpack.c.l.b16 %v1526_v51  ;;  %v3891_v59 = vld [vmem:[%s5450_s7 + $0x190] sm:$0xff]  ;;  %v3864_v51 = vld [vmem:[%s5450_s7 + $0xb8] sm:$0xff] }
 0x18c   : > { %2672 = vmatpush.bf16.msrb.mxu0 %v3891_v59  ;;  %2425 = vmatpush.bf16.msra.mxu3 %v3864_v51 }
 0x18d   : > { %vm1364_vm12 = vcmp.ge.f32.partialorder %v1334_v17, 0.0  ;;  %v1394_v46 = vmul.f32 0.2, %v1334_v17  ;;  %v1620_v48 = vpack.c.b16 %v1610_v38, %v1610_v38 }
 0x18e   : > { %v1150_v57 = vpop.f32.mrf.mxu1 }
 0x18f   : > { %v1151_v5 = vadd.f32 %v1150_v57, %v992_v7  ;;  %v1716_v37 = vshll.u32 %v1620_v48, 16  ;;  %v1777_v47 = vrot.slane %v1620_v48, 1  ;;  %v1424_v12 = vsel %vm1364_vm12, %v1334_v17, %v1394_v46  ;;  %v3863_v48 = vld [vmem:[%s5450_s7 + $0xb0] sm:$0xff] }
 0x190   : > { %v1497_v53 = vsel %vm1434_vm7, %v1424_v12, 0.0  ;;  %2673 = vmatpush.bf16.msrb.mxu0 %v3890_v40  ;;  %2426 = vmatpush.bf16.msra.mxu3 %v3863_v48  ;;  %v997_v12 = vpop.f32.mrf.mxu0 }
 0x191   : > { %v1301_v18 = vadd.f32 %v1263_v63, %v1151_v5  ;;  %v1718_v26 = vrot.slane %v1716_v37, 1  ;;  %v5008_v29 = vsel %vm1754_vm1, %v1776_v23, %v1777_v47  ;;  %v1527_v6 = vpack.c.bf16 %v1497_v53, %v1497_v53  ;;  %v3862_v23 = vld [vmem:[%s5450_s7 + $0xa8] sm:$0xff]  ;;  %v1268_v47 = vpop.f32.mrf.mxu2 }
 0x193   : > { %v1335_v42 = vadd.f32 %v5022_v41, %v1301_v18  ;;  %v5026_v28 = vsel %vm1623_vm0, %v1714_v20, %v1718_v26  ;;  %v1569_v19 = vunpack.c.l.b16 %v1527_v6 }
 0x194   : > { %2172 = vmatmul.bf16.gmra.mxu0 %v5008_v29  ;;  %2419 = vmatmul.bf16.gmra.mxu2 %v5026_v28 }
 0x195   : > { %vm1365_vm13 = vcmp.ge.f32.partialorder %v1335_v42, 0.0  ;;  %v1395_v43 = vmul.f32 0.2, %v1335_v42  ;;  %2674 = vmatpush.bf16.msrb.mxu0 %v3889_v35  ;;  %2427 = vmatpush.bf16.msra.mxu3 %v3862_v23 }
 0x196   : > { %v1153_v34 = vpop.f32.mrf.mxu1 }
 0x197   : > { %v1425_v50 = vsel %vm1365_vm13, %v1335_v42, %v1395_v43  ;;  %v1154_v14 = vadd.f32 %v1153_v34, %v995_v30  ;;  %v3859_v34 = vld [vmem:[%s5450_s7 + $0x90] sm:$0xff] }
 0x198   : > { %v1528_v27 = vpack.c.bf16 %v1425_v50, %v1425_v50  ;;  %v5065_v20 = vpop.f32.mrf.mxu0 }
 0x199   : > { %v1302_v36 = vadd.f32 %v1266_v33, %v1154_v14  ;;  %2365 = vmatmul.bf16.gmra.mxu1 %v4907_v44  ;;  %v1271_v18 = vpop.f32.mrf.mxu2 }
 0x19a   : > { %v1570_v17 = vunpack.c.l.b16 %v1528_v27 }
 0x19b   : > { %v1336_v38 = vadd.f32 %v5022_v41, %v1302_v36 }
 0x19c   : > { %v5040_v7 = vpack.c.b16 %v1570_v17, %v1569_v19  ;;  %v3858_v19 = vld [vmem:[%s5450_s7 + $0x88] sm:$0xff] }
 0x19d   : > { %vm1366_vm14 = vcmp.ge.f32.partialorder %v1336_v38, 0.0  ;;  %v1396_v46 = vmul.f32 0.2, %v1336_v38 }
 0x19e   : > { %2079 = vmatmul.bf16.gmra.mxu3 %v5040_v7  ;;  %v1779_v59 = vrot.slane %v5040_v7, 1  ;;  %v1155_v8 = vpop.f32.mrf.mxu1 }
 0x19f   : > { %v1426_v58 = vsel %vm1366_vm14, %v1336_v38, %v1396_v46  ;;  %v1156_v17 = vadd.f32 %v1155_v8, %v997_v12 }
 0x1a0   : > { %v1499_v11 = vsel %vm1439_vm10, %v1426_v58, 0.0  ;;  %v5072_v40 = vpop.f32.mrf.mxu0  ;;  %vm2942_vm10 = vcmask 523264  }
 0x1a1   : > { %v1529_v63 = vpack.c.bf16 %v1499_v11, %v1499_v11  ;;  %v1273_v26 = vpop.f32.mrf.mxu2  ;;  %v1303_v46 = vadd.f32 %v1268_v47, %v1156_v17 }
 0x1a3   : > { %v1611_v57 = vunpack.c.l.b16 %v1529_v63 }
 0x1a4   : > { %2773 = vmatmul.bf16.vlgmr.msra.gmra.mxu2 %v4837_v4 }
 0x1a5   : > { %v5049_v1 = vpack.c.b16 %v1611_v57, %v1611_v57 }
 0x1a6   : > { %v1158_v42 = vpop.f32.mrf.mxu1 }
 0x1a7   : > { %v1780_v5 = vrot.slane %v5049_v1, 1  ;;  %v1159_v38 = vadd.f32 %v1158_v42, %v4489_v9 }
 0x1a8   : > { %v5084_v43 = vpop.f32.mrf.mxu0 }
 0x1a9   : > { %2370 = vmatmul.bf16.gmra.mxu1 %v4976_v39  ;;  %v5055_v37 = vsel %vm1754_vm1, %v1779_v59, %v1780_v5  ;;  %v5074_v53 = vpop.f32.mrf.mxu3  ;;  %v1304_v48 = vadd.f32 %v1271_v18, %v1159_v38 }
 0x1aa   : > { %2177 = vmatmul.bf16.gmra.mxu0 %v5055_v37 }
 0x1ab   : > { %v1338_v63 = vadd.f32 %v5022_v41, %v1304_v48 }
 0x1ad   : > { %v1398_v23 = vmul.f32 0.2, %v1338_v63  ;;  %vm1368_vm4 = vcmp.ge.f32.partialorder %v1338_v63, 0.0 }
 0x1ae   : > { %2093 = vmatmul.bf16.vlgmr.msrb.gmra.mxu3 %v4785_v60  ;;  %v3861_v60 = vld [vmem:[%s5450_s7 + $0xa0] sm:$0xff]  ;;  %v1160_v6 = vpop.f32.mrf.mxu1 }
 0x1af   : > { %2428 = vmatpush.bf16.msra.mxu3 %v3861_v60  ;;  %v1161_v33 = vadd.f32 %v1160_v6, %v4497_v13 }
 0x1b1   : > { %v5086_v45 = vpop.f32.mrf.mxu3 }
 0x1b4   : > { %2778 = vmatmul.bf16.gmra.mxu2 %v4863_v16 }
 0x1b6   : > { %v5103_v50 = vpop.f32.mrf.mxu1 }
 0x1b9   : > { %2724 = vmatmul.bf16.vlgmr.msrb.gmra.mxu1 %v4812_v22 }
 0x1ba   : > { %2675 = vmatmul.bf16.vlgmr.msrb.gmra.mxu0 %v4781_v56  ;;  %v5078_v56 = vpop.f32.mrf.mxu2 }
 0x1be   : > { %2098 = vmatmul.bf16.gmra.mxu3 %v4812_v22  ;;  %v3860_v22 = vld [vmem:[%s5450_s7 + $0x98] sm:$0xff]  ;;  %v5117_v27 = vpop.f32.mrf.mxu1 }
 0x1bf   : > { %2429 = vmatpush.bf16.msra.mxu3 %v3860_v22 }
 0x1c2   : > { %v5089_v30 = vpop.f32.mrf.mxu2 }
 0x1c3   : > { %2430 = vmatpush.bf16.msra.mxu3 %v3859_v34 }
 0x1c4   : > { %2783 = vmatmul.bf16.gmra.mxu2 %v4886_v21 }
 0x1c6   : > { %v5134_v57 = vpop.f32.mrf.mxu1 }
 0x1c7   : > { %2431 = vmatpush.bf16.msra.mxu3 %v3858_v19 }
 0x1c9   : > { %2729 = vmatmul.bf16.gmra.mxu1 %v4840_v25 }
 0x1ca   : > { %2680 = vmatmul.bf16.gmra.mxu0 %v4790_v0  ;;  %v5091_v0 = vpop.f32.mrf.mxu3  ;;  %v5101_v35 = vpop.f32.mrf.mxu2 }
 0x1ce   : > { %2103 = vmatmul.bf16.gmra.mxu3 %v4840_v25  ;;  %v5094_v25 = vpop.f32.mrf.mxu0  ;;  %v5156_v8 = vpop.f32.mrf.mxu1 }
 0x1d2   : > { %v5105_v14 = vpop.f32.mrf.mxu3 }
 0x1d4   : > { %2788 = vmatmul.bf16.gmra.mxu2 %v4920_v62 }
 0x1d6   : > { %v5107_v51 = vpop.f32.mrf.mxu0  ;;  %v5169_v24 = vpop.f32.mrf.mxu1 }
 0x1d9   : > { %2734 = vmatmul.bf16.gmra.mxu1 %v4866_v55 }
 0x1da   : > { %2685 = vmatmul.bf16.gmra.mxu0 %v4828_v61  ;;  %v5112_v61 = vpop.f32.mrf.mxu3 }
 0x1de   : > { %2108 = vmatmul.bf16.gmra.mxu3 %v4866_v55  ;;  %v5114_v55 = vpop.f32.mrf.mxu2  ;;  %v5119_v36 = vpop.f32.mrf.mxu0 }
 0x1e2   : > { %v5128_v58 = vpop.f32.mrf.mxu3 }
 0x1e3   : > { %5478 = vst [vmem:[#allocation7_spill] sm:$0xff] %v5128_v58 }
 0x1e4   : > { %2793 = vmatmul.bf16.gmra.mxu2 %v4966_v10 }
 0x1e6   : > { %v5130_v11 = vpop.f32.mrf.mxu2  ;;  %v5136_v59 = vpop.f32.mrf.mxu0 }
 0x1e9   : > { %2739 = vmatmul.bf16.gmra.mxu1 %v4893_v49 }
 0x1ea   : > { %2690 = vmatmul.bf16.gmra.mxu0 %v4871_v2  ;;  %v1305_v2 = vadd.f32 %v1273_v26, %v1161_v33 }
 0x1ec   : > { %v1339_v13 = vadd.f32 %v5022_v41, %v1305_v2 }
 0x1ee   : > { %2113 = vmatmul.bf16.gmra.mxu3 %v4893_v49  ;;  %v1337_v49 = vadd.f32 %v5022_v41, %v1303_v46  ;;  %v1399_v9 = vmul.f32 0.2, %v1339_v13  ;;  %vm1369_vm15 = vcmp.ge.f32.partialorder %v1339_v13, 0.0  ;;  %v3857_v41 = vld [vmem:[%s5450_s7 + $0x80] sm:$0xff]  ;;  %v5154_v60 = vpop.f32.mrf.mxu2  ;;  %v5160_v22 = vpop.f32.mrf.mxu0 }
 0x1ef   : > { %2432 = vmatpush.bf16.msra.mxu3 %v3857_v41 }
 0x1f0   : > { %v1397_v5 = vmul.f32 0.2, %v1337_v49  ;;  %vm1367_vm2 = vcmp.ge.f32.partialorder %v1337_v49, 0.0  ;;  %v1429_v47 = vsel %vm1369_vm15, %v1339_v13, %v1399_v9 }
 0x1f1   : > { %v5140_v12 = vpop.f32.mrf.mxu3  ;;  %v1502_v26 = vsel %vm1454_vm5, %v1429_v47, 0.0  ;;  %v1721_v47 = vshrl.u32 %v5040_v7, 16 }
 0x1f2   : > { %5479 = vst [vmem:[#allocation8_spill] sm:$0xff] %v5140_v12  ;;  %v1427_v18 = vsel %vm1367_vm2, %v1337_v49, %v1397_v5  ;;  %v1532_v42 = vpack.c.bf16 %v1502_v26, %v1502_v26 }
 0x1f3   : > { %v1500_v15 = vsel %vm1452_vm6, %v1427_v18, 0.0  ;;  %v5182_v18 = vpop.f32.mrf.mxu1 }
 0x1f4   : > { %2798 = vmatmul.bf16.gmra.mxu2 %v5008_v29  ;;  %v1530_v6 = vpack.c.bf16 %v1500_v15, %v1500_v15  ;;  %v1612_v33 = vunpack.c.l.b16 %v1532_v42 }
 0x1f6   : > { %v1571_v19 = vunpack.c.l.b16 %v1530_v6  ;;  %v5166_v38 = vpop.f32.mrf.mxu2  ;;  %v1622_v2 = vpack.c.b16 %v1612_v33, %v1612_v33  ;;  %v5171_v46 = vpop.f32.mrf.mxu0 }
 0x1f8   : > { %v1783_v49 = vrot.slane %v1622_v2, 1  ;;  %v1740_v6 = vshll.u32 %v1622_v2, 16  ;;  %v1756_v2 = vrot.slane %v4703_v32, 1  ;;  %v3915_v32 = vld [vmem:[%s5452_s9 + $0x10] sm:$0xff] }
 0x1f9   : > { %2744 = vmatmul.bf16.gmra.mxu1 %v4946_v54  ;;  %v5163_v3 = vpop.f32.mrf.mxu3 }
 0x1fa   : > { %2695 = vmatmul.bf16.gmra.mxu0 %v4907_v44  ;;  %v1428_v44 = vsel %vm1368_vm4, %v1338_v63, %v1398_v23  ;;  %5480 = vst [vmem:[#allocation9_spill] sm:$0xff] %v5163_v3  ;;  %v1728_v63 = vshll.u32 %v5049_v1, 16 }
 0x1fc   : > { %v1730_v41 = vrot.slane %v1728_v63, 1 }
 0x1fe   : > { %2118 = vmatmul.bf16.gmra.mxu3 %v4946_v54  ;;  %v1501_v54 = vsel %vm4375_vm3, %v1428_v44, 0.0 }
 0x1ff   : > { %v1531_v34 = vpack.c.bf16 %v1501_v54, %v1501_v54  ;;  %v5190_v54 = vpop.f32.mrf.mxu1 }
 0x201   : > { %v1572_v17 = vunpack.c.l.b16 %v1531_v34 }
 0x203   : > { %v1582_v48 = vpack.c.b16 %v1572_v17, %v1571_v19  ;;  %v1742_v17 = vrot.slane %v1740_v6, 1 }
 0x204   : > { %2803 = vmatmul.bf16.gmra.mxu2 %v5055_v37  ;;  %v1723_v37 = vshll.u32 %v5040_v7, 16 }
 0x205   : > { %v1782_v9 = vrot.slane %v1582_v48, 1  ;;  %v1735_v1 = vshll.u32 %v1582_v48, 16  ;;  %v1733_v19 = vshrl.u32 %v1582_v48, 16 }
 0x206   : > { %v1725_v5 = vrot.slane %v1723_v37, 1  ;;  %v3916_v37 = vld [vmem:[%s5452_s9 + $0x18] sm:$0xff] }
 0x207   : > { %v1784_v23 = vsel %vm1754_vm1, %v1782_v9, %v1783_v49  ;;  %v1737_v33 = vrot.slane %v1735_v1, 1  ;;  %2971 = vmatpush.bf16.msrb.mxu3 %v3916_v37  ;;  %v5200_v63 = vpop.f32.mrf.mxu1 }
 0x208   : > { %v1726_v44 = vor.u32 %v1725_v5, %v1721_v47 }
 0x209   : > { %2749 = vmatmul.bf16.gmra.mxu1 %v5026_v28  ;;  %v5175_v13 = vpop.f32.mrf.mxu3  ;;  %v1738_v49 = vor.u32 %v1737_v33, %v1733_v19 }
 0x20a   : > { %2700 = vmatmul.bf16.gmra.mxu0 %v4976_v39  ;;  %5481 = vst [vmem:[#allocation10_spill] sm:$0xff] %v5175_v13  ;;  %v5179_v39 = vpop.f32.mrf.mxu2  ;;  %v1731_v26 = vsel %vm1623_vm0, %v1726_v44, %v1730_v41 }
 0x20b   : > { %5482 = vst [vmem:[#allocation11_spill] sm:$0xff] %v5179_v39  ;;  %2972 = vmatpush.bf16.msrb.mxu3 %v3915_v32 }
 0x20e   : > { %2123 = vmatmul.bf16.gmra.mxu3 %v5026_v28  ;;  %v5184_v28 = vpop.f32.mrf.mxu0 }
 0x211   : > { %v5187_v15 = vpop.f32.mrf.mxu3 }
 0x212   : > { %5483 = vst [vmem:[#allocation12_spill] sm:$0xff] %v5187_v15 }
 0x214   : > { %2808 = vmatmul.bf16.gmra.mxu2 %v1784_v23  ;;  %v1755_v23 = vrot.slane %v4693_v31, 1 }
 0x216   : > { %v5192_v42 = vpop.f32.mrf.mxu0  ;;  %v1757_v47 = vsel %vm1754_vm1, %v1755_v23, %v1756_v2 }
 0x219   : > { %2754 = vmatmul.bf16.gmra.mxu1 %v1731_v26 }
 0x21a   : > { %2705 = vmatmul.bf16.gmra.mxu0 %v5040_v7  ;;  %v1743_v7 = vsel %vm1623_vm0, %v1738_v49, %v1742_v17 }
 0x21e   : > { %2128 = vmatmul.bf16.gmra.mxu3 %v1731_v26  ;;  %v5205_v5 = vpop.f32.mrf.mxu0  ;;  %v5211_v26 = vpop.f32.mrf.mxu1 }
 0x21f   : > { %5486 = vst [vmem:[#allocation15_spill] sm:$0xff] %v5211_v26 }
 0x221   : > { %v5194_v34 = vpop.f32.mrf.mxu3 }
 0x222   : > { %5484 = vst [vmem:[#allocation13_spill] sm:$0xff] %v5194_v34  ;;  %v3914_v34 = vld [vmem:[%s5452_s9 + $0x8] sm:$0xff] }
 0x223   : > { %2973 = vmatpush.bf16.msrb.mxu3 %v3914_v34 }
 0x226   : > { %v5213_v1 = vpop.f32.mrf.mxu0  ;;  %v5223_v31 = vpop.f32.mrf.mxu1 }
 0x227   : > { %5487 = vst [vmem:[#allocation16_spill] sm:$0xff] %v5213_v1 }
 0x228   : > { %5489 = vst [vmem:[#allocation18_spill] sm:$0xff] %v5223_v31 }
 0x229   : > { %v5202_v9 = vpop.f32.mrf.mxu3  ;;  %2759 = vmatmul.bf16.gmra.mxu1 %v1743_v7 }
 0x22a   : > { %5485 = vst [vmem:[#allocation14_spill] sm:$0xff] %v5202_v9  ;;  %2710 = vmatmul.bf16.gmra.mxu0 %v1582_v48  ;;  %v5221_v48 = vpop.f32.mrf.mxu2 }
 0x22b   : > { %5488 = vst [vmem:[#allocation17_spill] sm:$0xff] %v5221_v48 }
 0x22e   : > { %2433 = vmatmul.bf16.vlgmr.msra.gmra.mxu3 %v1757_v47  ;;  %v5225_v33 = vpop.f32.mrf.mxu0 }
 0x22f   : > { %5490 = vst [vmem:[#allocation19_spill] sm:$0xff] %v5225_v33 }
 0x231   : > { %v2094_v41 = vpop.f32.mrf.mxu3 }
 0x232   : > { %v5230_v17 = vpop.f32.mrf.mxu2 }
 0x233   : > { %5491 = vst [vmem:[#allocation20_spill] sm:$0xff] %v5230_v17 }
 0x236   : > { %v5234_v37 = vpop.f32.mrf.mxu0 }
 0x237   : > { %5493 = vst [vmem:[#allocation22_spill] sm:$0xff] %v5234_v37 }
 0x239   : > { %v5209_v44 = vpop.f32.mrf.mxu3 }
 0x23a   : > { %v5238_v7 = vpop.f32.mrf.mxu2  ;;  %v2097_v33 = vadd.f32 %v5209_v44, %v5072_v40 }
 0x23b   : > { %5494 = vst [vmem:[#allocation23_spill] sm:$0xff] %v5238_v7 }
 0x23e   : > { %2438 = vmatmul.bf16.gmra.mxu3 %v4809_v52  ;;  %v5232_v52 = vpop.f32.mrf.mxu1  ;;  %v5244_v47 = vpop.f32.mrf.mxu0 }
 0x23f   : > { %5492 = vst [vmem:[#allocation21_spill] sm:$0xff] %v5232_v52 }
 0x240   : > { %5496 = vst [vmem:[#allocation25_spill] sm:$0xff] %v5244_v47 }
 0x241   : > { %v5216_v6 = vpop.f32.mrf.mxu3 }
 0x246   : > { %v5242_v23 = vpop.f32.mrf.mxu1  ;;  %v5256_v15 = vpop.f32.mrf.mxu0 }
 0x247   : > { %5495 = vst [vmem:[#allocation24_spill] sm:$0xff] %v5242_v23 }
 0x248   : > { %5499 = vst [vmem:[#allocation28_spill] sm:$0xff] %v5256_v15 }
 0x249   : > { %v5227_v19 = vpop.f32.mrf.mxu3 }
 0x24e   : > { %2443 = vmatmul.bf16.gmra.mxu3 %v4837_v4  ;;  %v5249_v4 = vpop.f32.mrf.mxu2  ;;  %v5251_v9 = vpop.f32.mrf.mxu1 }
 0x24f   : > { %5497 = vst [vmem:[#allocation26_spill] sm:$0xff] %v5249_v4 }
 0x250   : > { %5498 = vst [vmem:[#allocation27_spill] sm:$0xff] %v5251_v9 }
 0x251   : > { %v5236_v49 = vpop.f32.mrf.mxu3 }
 0x256   : > { %v5260_v23 = vpop.f32.mrf.mxu2  ;;  %v5262_v7 = vpop.f32.mrf.mxu1 }
 0x257   : > { %5500 = vst [vmem:[#allocation29_spill] sm:$0xff] %v5260_v23 }
 0x258   : > { %5501 = vst [vmem:[#allocation30_spill] sm:$0xff] %v5262_v7 }
 0x259   : > { %v5240_v2 = vpop.f32.mrf.mxu3 }
 0x25e   : > { %2448 = vmatmul.bf16.gmra.mxu3 %v4863_v16  ;;  %v5265_v16 = vpop.f32.mrf.mxu0  ;;  %v5269_v9 = vpop.f32.mrf.mxu2 }
 0x25f   : > { %5502 = vst [vmem:[#allocation31_spill] sm:$0xff] %v5265_v16  ;;  %v5271_v47 = vpop.f32.mrf.mxu1 }
 0x260   : > { %5503 = vst [vmem:[#allocation32_spill] sm:$0xff] %v5269_v9  ;;  %v3913_v9 = vld [vmem:[%s5452_s9] sm:$0xff] }
 0x261   : > { %v5247_v32 = vpop.f32.mrf.mxu3  ;;  %5504 = vst [vmem:[#allocation33_spill] sm:$0xff] %v5271_v47  ;;  %2974 = vmatpush.bf16.msrb.mxu3 %v3913_v9 }
 0x266   : > { %v5273_v52 = vpop.f32.mrf.mxu0  ;;  %v5278_v34 = vpop.f32.mrf.mxu2 }
 0x267   : > { %5505 = vst [vmem:[#allocation34_spill] sm:$0xff] %v5273_v52  ;;  %v5282_v7 = vpop.f32.mrf.mxu1 }
 0x268   : > { %5507 = vst [vmem:[#allocation36_spill] sm:$0xff] %v5278_v34 }
 0x269   : > { %v5258_v13 = vpop.f32.mrf.mxu3  ;;  %5509 = vst [vmem:[#allocation38_spill] sm:$0xff] %v5282_v7 }
 0x26e   : > { %2453 = vmatmul.bf16.gmra.mxu3 %v4886_v21  ;;  %v5284_v21 = vpop.f32.mrf.mxu0  ;;  %v5289_v47 = vpop.f32.mrf.mxu2 }
 0x26f   : > { %5510 = vst [vmem:[#allocation39_spill] sm:$0xff] %v5284_v21  ;;  %v2725_v16 = vpop.f32.mrf.mxu1 }
 0x270   : > { %5511 = vst [vmem:[#allocation40_spill] sm:$0xff] %v5289_v47  ;;  %v2095_v47 = vadd.f32 %v2094_v41, %v5065_v20 }
 0x271   : > { %v5267_v4 = vpop.f32.mrf.mxu3 }
 0x272   : > { %v2144_v12 = vadd.f32 %v5107_v51, %v2095_v47  ;;  %v2100_v51 = vadd.f32 %v5216_v6, %v5084_v43 }
 0x276   : > { %v2676_v3 = vpop.f32.mrf.mxu0  ;;  %v2774_v34 = vpop.f32.mrf.mxu2 }
 0x277   : > { %v2727_v17 = vpop.f32.mrf.mxu1  ;;  %v2726_v26 = vadd.f32 %v2725_v16, %v2676_v3 }
 0x279   : > { %v5275_v15 = vpop.f32.mrf.mxu3  ;;  %v2775_v41 = vadd.f32 %v2774_v34, %v2726_v26 }
 0x27a   : > { %5506 = vst [vmem:[#allocation35_spill] sm:$0xff] %v5275_v15 }
 0x27e   : > { %2458 = vmatmul.bf16.gmra.mxu3 %v4920_v62  ;;  %v2678_v7 = vpop.f32.mrf.mxu0  ;;  %v2776_v21 = vpop.f32.mrf.mxu2 }
 0x27f   : > { %v2730_v31 = vpop.f32.mrf.mxu1  ;;  %v2728_v1 = vadd.f32 %v2727_v17, %v2678_v7 }
 0x281   : > { %v5280_v23 = vpop.f32.mrf.mxu3 }
 0x282   : > { %5508 = vst [vmem:[#allocation37_spill] sm:$0xff] %v5280_v23 }
 0x286   : > { %v2681_v9 = vpop.f32.mrf.mxu0 }
 0x289   : > { %v5291_v52 = vpop.f32.mrf.mxu3 }
 0x28a   : > { %5512 = vst [vmem:[#allocation41_spill] sm:$0xff] %v5291_v52  ;;  %v2779_v52 = vpop.f32.mrf.mxu2 }
 0x28e   : > { %2463 = vmatmul.bf16.gmra.mxu3 %v4966_v10  ;;  %v2683_v48 = vpop.f32.mrf.mxu0 }
 0x291   : > { %v5294_v62 = vpop.f32.mrf.mxu3 }
 0x292   : > { %5513 = vst [vmem:[#allocation42_spill] sm:$0xff] %v5294_v62  ;;  %v2732_v62 = vpop.f32.mrf.mxu1 }
 0x296   : > { %v2686_v39 = vpop.f32.mrf.mxu0 }
 0x299   : > { %v5296_v37 = vpop.f32.mrf.mxu3 }
 0x29a   : > { %5514 = vst [vmem:[#allocation43_spill] sm:$0xff] %v5296_v37  ;;  %v2337_v37 = vadd.f32 %v5103_v50, %v2144_v12  ;;  %v2735_v47 = vpop.f32.mrf.mxu1  ;;  %v5316_v50 = vld [vmem:[%s5451_s8] ss:$0 sm:$0xff]  ;;  %v2777_v12 = vadd.f32 %v2776_v21, %v2728_v1 }
 0x29c   : > { %v2386_v15 = vadd.f32 %v5078_v56, %v2337_v37  ;;  %v2149_v56 = vadd.f32 %v5136_v59, %v2100_v51  ;;  %v2731_v37 = vadd.f32 %v2730_v31, %v2681_v9 }
 0x29e   : > { %2468 = vmatmul.bf16.gmra.mxu3 %v5008_v29  ;;  %v2146_v29 = vadd.f32 %v5119_v36, %v2097_v33  ;;  %v2342_v26 = vadd.f32 %v5134_v57, %v2149_v56  ;;  %v2688_v59 = vpop.f32.mrf.mxu0  ;;  %v2780_v57 = vadd.f32 %v2779_v52, %v2731_v37 }
 0x2a0   : > { %v2391_v7 = vadd.f32 %v5101_v35, %v2342_v26 }
 0x2a1   : > { %v5299_v23 = vpop.f32.mrf.mxu3 }
 0x2a2   : > { %5515 = vst [vmem:[#allocation44_spill] sm:$0xff] %v5299_v23  ;;  %v2781_v23 = vpop.f32.mrf.mxu2  ;;  %v2737_v6 = vpop.f32.mrf.mxu1 }
 0x2a6   : > { %v2691_v51 = vpop.f32.mrf.mxu0 }
 0x2a9   : > { %v5303_v10 = vpop.f32.mrf.mxu3 }
 0x2aa   : > { %5516 = vst [vmem:[#allocation45_spill] sm:$0xff] %v5303_v10  ;;  %v2339_v10 = vadd.f32 %v5117_v27, %v2146_v29  ;;  %v2102_v27 = vadd.f32 %v5227_v19, %v5094_v25  ;;  %v2740_v35 = vpop.f32.mrf.mxu1 }
 0x2ac   : > { %v2388_v36 = vadd.f32 %v5089_v30, %v2339_v10  ;;  %v2151_v30 = vadd.f32 %v5160_v22, %v2102_v27  ;;  %v2105_v10 = vadd.f32 %v5236_v49, %v5074_v53  ;;  %v2733_v22 = vadd.f32 %v2732_v62, %v2683_v48 }
 0x2ad   : > { %v2107_v53 = vadd.f32 %v5240_v2, %v5086_v45  ;;  %v2736_v62 = vadd.f32 %v2735_v47, %v2686_v39 }
 0x2ae   : > { %v2344_v31 = vadd.f32 %v5156_v8, %v2151_v30  ;;  %v2782_v56 = vadd.f32 %v2781_v23, %v2733_v22  ;;  %v2693_v2 = vpop.f32.mrf.mxu0 }
 0x2b1   : > { %v2434_v58 = vpop.f32.mrf.mxu3 }
 0x2b2   : > { %v2435_v20 = vadd.f32 %v2434_v58, %v2386_v15  ;;  %v2784_v15 = vpop.f32.mrf.mxu2 }
 0x2b4   : > { %v2814_v40 = vadd.f32 %v2775_v41, %v2435_v20  ;;  %v2154_v20 = vadd.f32 %v5171_v46, %v2105_v10  ;;  %v2393_v41 = vadd.f32 %v5114_v55, %v2344_v31  ;;  %v2156_v55 = vadd.f32 %v5184_v28, %v2107_v53 }
 0x2b5   : > { %v2738_v28 = vadd.f32 %v2737_v6, %v2688_v59 }
 0x2b6   : > { %v2834_v3 = vadd.f32 %v5316_v50, %v2814_v40  ;;  %v2347_v49 = vadd.f32 %v5169_v24, %v2154_v20  ;;  %v2785_v24 = vadd.f32 %v2784_v15, %v2736_v62  ;;  %v2349_v39 = vadd.f32 %v5182_v18, %v2156_v55 }
 0x2b7   : > { %v2112_v15 = vadd.f32 %v5258_v13, %v5105_v14 }
 0x2b8   : > { %v2866_v33 = vmul.f32 0.2, %v2834_v3  ;;  %vm2850_vm3 = vcmp.ge.f32.partialorder %v2834_v3, 0.0  ;;  %v2396_v23 = vadd.f32 %v5130_v11, %v2347_v49  ;;  %v2398_v11 = vadd.f32 %v5154_v60, %v2349_v39  ;;  %v5520_v49 = vld [vmem:[#allocation35_spill] sm:$0xff] }
 0x2b9   : > { %v2436_v58 = vpop.f32.mrf.mxu3  ;;  %v2161_v60 = vadd.f32 %v5205_v5, %v2112_v15  ;;  %v5527_v15 = vld [vmem:[#allocation22_spill] sm:$0xff] }
 0x2ba   : > { %v2437_v43 = vadd.f32 %v2436_v58, %v2388_v36  ;;  %v2882_v34 = vsel %vm2850_vm3, %v2834_v3, %v2866_v33  ;;  %v2786_v9 = vpop.f32.mrf.mxu2  ;;  %v2110_v33 = vadd.f32 %v5247_v32, %v5091_v0 }
 0x2bb   : > { %v2354_v22 = vadd.f32 %v5200_v63, %v2161_v60  ;;  %v5521_v63 = vld [vmem:[#allocation15_spill] sm:$0xff] }
 0x2bc   : > { %v2815_v44 = vadd.f32 %v2777_v12, %v2437_v43  ;;  %v2742_v43 = vpop.f32.mrf.mxu1 }
 0x2be   : > { %v2835_v17 = vadd.f32 %v5316_v50, %v2815_v44 }
 0x2c0   : > { %vm2851_vm7 = vcmp.ge.f32.partialorder %v2835_v17, 0.0  ;;  %v2867_v1 = vmul.f32 0.2, %v2835_v17 }
 0x2c1   : > { %v2439_v16 = vpop.f32.mrf.mxu3 }
 0x2c2   : > { %v2883_v21 = vsel %vm2851_vm7, %v2835_v17, %v2867_v1  ;;  %v2440_v25 = vadd.f32 %v2439_v16, %v2391_v7  ;;  %v2789_v46 = vpop.f32.mrf.mxu2  ;;  %v2159_v17 = vadd.f32 %v5192_v42, %v2110_v33  ;;  %v2787_v1 = vadd.f32 %v2786_v9, %v2738_v28 }
 0x2c3   : > { %v2898_v19 = vpack.c.bf16 %v2883_v21, %v2882_v34  ;;  %v2696_v34 = vpop.f32.mrf.mxu0  ;;  %v2741_v42 = vadd.f32 %v2740_v35, %v2691_v51  ;;  %v5518_v51 = vld [vmem:[#allocation11_spill] sm:$0xff] }
 0x2c4   : > { %v2816_v29 = vadd.f32 %v2780_v57, %v2440_v25  ;;  %v2745_v0 = vpop.f32.mrf.mxu1  ;;  %v2352_v18 = vadd.f32 %v5190_v54, %v2159_v17  ;;  %v2115_v54 = vadd.f32 %v5267_v4, %v5112_v61  ;;  %v5525_v17 = vld [vmem:[#allocation37_spill] sm:$0xff] }
 0x2c5   : > { %3801 = vmatmul.msk.bf16.vlgmr.msrb.gmra.mxu3 %vm2942_vm10, %v2898_v19  ;;  %v2790_v9 = vadd.f32 %v2789_v46, %v2741_v42  ;;  %v2746_v55 = vadd.f32 %v2745_v0, %v2696_v34 }
 0x2c6   : > { %v2836_v52 = vadd.f32 %v5316_v50, %v2816_v29  ;;  %v2401_v25 = vadd.f32 %v5166_v38, %v2352_v18  ;;  %v2743_v29 = vadd.f32 %v2742_v43, %v2693_v2 }
 0x2c8   : > { %v2868_v58 = vmul.f32 0.2, %v2836_v52  ;;  %vm2852_vm0 = vcmp.ge.f32.partialorder %v2836_v52, 0.0 }
 0x2c9   : > { %v2441_v40 = vpop.f32.mrf.mxu3 }
 0x2ca   : > { %v2442_v36 = vadd.f32 %v2441_v40, %v2393_v41  ;;  %v2884_v44 = vsel %vm2852_vm0, %v2836_v52, %v2868_v58  ;;  %v2791_v37 = vpop.f32.mrf.mxu2  ;;  %v5517_v41 = vld [vmem:[#allocation16_spill] sm:$0xff]  ;;  %v2403_v40 = vadd.f32 %v5518_v51, %v2354_v22  ;;  %v5532_v22 = vld [vmem:[#allocation25_spill] sm:$0xff] }
 0x2cb   : > { %v2698_v35 = vpop.f32.mrf.mxu0  ;;  %v2164_v38 = vadd.f32 %v5517_v41, %v2115_v54  ;;  %v2792_v52 = vadd.f32 %v2791_v37, %v2743_v29  ;;  %v5526_v37 = vld [vmem:[#allocation18_spill] sm:$0xff] }
 0x2cc   : > { %v2817_v8 = vadd.f32 %v2782_v56, %v2442_v36  ;;  %v2747_v5 = vpop.f32.mrf.mxu1 }
 0x2cd   : > { %v2357_v58 = vadd.f32 %v5521_v63, %v2164_v38 }
 0x2ce   : > { %v2837_v48 = vadd.f32 %v5316_v50, %v2817_v8  ;;  %v5519_v8 = vld [vmem:[#allocation7_spill] sm:$0xff] }
 0x2cf   : > { %v2117_v61 = vadd.f32 %v5520_v49, %v5519_v8  ;;  %v5535_v8 = vld [vmem:[#allocation42_spill] sm:$0xff] }
 0x2d0   : > { %vm2853_vm1 = vcmp.ge.f32.partialorder %v2837_v48, 0.0  ;;  %v2869_v12 = vmul.f32 0.2, %v2837_v48 }
 0x2d1   : > { %v2444_v3 = vpop.f32.mrf.mxu3 }
 0x2d2   : > { %v2445_v27 = vadd.f32 %v2444_v3, %v2396_v23  ;;  %v2885_v45 = vsel %vm2853_vm1, %v2837_v48, %v2869_v12  ;;  %v2794_v13 = vpop.f32.mrf.mxu2  ;;  %v5522_v12 = vld [vmem:[#allocation19_spill] sm:$0xff] }
 0x2d3   : > { %v2899_v26 = vpack.c.bf16 %v2885_v45, %v2884_v44  ;;  %v2166_v23 = vadd.f32 %v5522_v12, %v2117_v61  ;;  %v2701_v45 = vpop.f32.mrf.mxu0  ;;  %v2795_v28 = vadd.f32 %v2794_v13, %v2746_v55  ;;  %v5538_v12 = vld [vmem:[#allocation26_spill] sm:$0xff] }
 0x2d4   : > { %v2818_v47 = vadd.f32 %v2785_v24, %v2445_v27  ;;  %v2750_v3 = vpop.f32.mrf.mxu1  ;;  %v5523_v27 = vld [vmem:[#allocation17_spill] sm:$0xff] }
 0x2d5   : > { %3802 = vmatmul.msk.bf16.gmra.mxu3 %vm2942_vm10, %v2899_v26  ;;  %v2406_v44 = vadd.f32 %v5523_v27, %v2357_v58  ;;  %v2751_v54 = vadd.f32 %v2750_v3, %v2701_v45 }
 0x2d6   : > { %v2838_v7 = vadd.f32 %v5316_v50, %v2818_v47  ;;  %v5524_v47 = vld [vmem:[#allocation8_spill] sm:$0xff] }
 0x2d8   : > { %v2870_v6 = vmul.f32 0.2, %v2838_v7  ;;  %vm2854_vm8 = vcmp.ge.f32.partialorder %v2838_v7, 0.0 }
 0x2d9   : > { %v2446_v30 = vpop.f32.mrf.mxu3 }
 0x2da   : > { %v2447_v16 = vadd.f32 %v2446_v30, %v2398_v11  ;;  %v2886_v10 = vsel %vm2854_vm8, %v2838_v7, %v2870_v6  ;;  %v2796_v48 = vpop.f32.mrf.mxu2  ;;  %v2120_v11 = vadd.f32 %v5525_v17, %v5524_v47  ;;  %v2359_v30 = vadd.f32 %v5526_v37, %v2166_v23 }
 0x2dc   : > { %v2819_v32 = vadd.f32 %v2787_v1, %v2447_v16  ;;  %v2748_v1 = vadd.f32 %v2747_v5, %v2698_v35  ;;  %v2169_v0 = vadd.f32 %v5527_v15, %v2120_v11  ;;  %v5543_v15 = vld [vmem:[#allocation29_spill] sm:$0xff] }
 0x2de   : > { %v2839_v59 = vadd.f32 %v5316_v50, %v2819_v32  ;;  %v5528_v32 = vld [vmem:[#allocation20_spill] sm:$0xff]  ;;  %v2797_v6 = vadd.f32 %v2796_v48, %v2748_v1  ;;  %v5542_v1 = vld [vmem:[#allocation31_spill] sm:$0xff] }
 0x2df   : > { %v2408_v18 = vadd.f32 %v5528_v32, %v2359_v30 }
 0x2e0   : > { %vm2855_vm9 = vcmp.ge.f32.partialorder %v2839_v59, 0.0  ;;  %v2871_v21 = vmul.f32 0.2, %v2839_v59 }
 0x2e1   : > { %v2449_v19 = vpop.f32.mrf.mxu3 }
 0x2e2   : > { %v2450_v57 = vadd.f32 %v2449_v19, %v2401_v25  ;;  %v2887_v14 = vsel %vm2855_vm9, %v2839_v59, %v2871_v21  ;;  %v2799_v16 = vpop.f32.mrf.mxu2  ;;  %v2752_v59 = vpop.f32.mrf.mxu1  ;;  %v5529_v25 = vld [vmem:[#allocation9_spill] sm:$0xff] }
 0x2e3   : > { %v2900_v31 = vpack.c.bf16 %v2887_v14, %v2886_v10  ;;  %v2703_v21 = vpop.f32.mrf.mxu0  ;;  %v5530_v19 = vld [vmem:[#allocation41_spill] sm:$0xff] }
 0x2e4   : > { %v2820_v20 = vadd.f32 %v2790_v9, %v2450_v57  ;;  %v2122_v57 = vadd.f32 %v5530_v19, %v5529_v25  ;;  %v5531_v14 = vld [vmem:[#allocation21_spill] sm:$0xff]  ;;  %v2753_v48 = vadd.f32 %v2752_v59, %v2703_v21  ;;  %v5545_v21 = vld [vmem:[#allocation44_spill] sm:$0xff]  ;;  %v5546_v19 = vld [vmem:[#allocation30_spill] sm:$0xff] }
 0x2e5   : > { %3803 = vmatmul.msk.bf16.gmra.mxu3 %vm2942_vm10, %v2900_v31  ;;  %v2362_v13 = vadd.f32 %v5531_v14, %v2169_v0 }
 0x2e6   : > { %v2840_v36 = vadd.f32 %v5316_v50, %v2820_v20  ;;  %v2171_v29 = vadd.f32 %v5532_v22, %v2122_v57  ;;  %v5533_v20 = vld [vmem:[#allocation23_spill] sm:$0xff]  ;;  %v5548_v22 = vld [vmem:[#allocation32_spill] sm:$0xff] }
 0x2e7   : > { %v2411_v35 = vadd.f32 %v5533_v20, %v2362_v13 }
 0x2e8   : > { %v2872_v62 = vmul.f32 0.2, %v2840_v36  ;;  %vm2856_vm11 = vcmp.ge.f32.partialorder %v2840_v36, 0.0 }
 0x2e9   : > { %v2451_v56 = vpop.f32.mrf.mxu3 }
 0x2ea   : > { %v2452_v53 = vadd.f32 %v2451_v56, %v2403_v40  ;;  %v2888_v24 = vsel %vm2856_vm11, %v2840_v36, %v2872_v62  ;;  %v2801_v41 = vpop.f32.mrf.mxu2  ;;  %v2800_v36 = vadd.f32 %v2799_v16, %v2751_v54  ;;  %v2755_v61 = vpop.f32.mrf.mxu1 }
 0x2eb   : > { %v2706_v58 = vpop.f32.mrf.mxu0 }
 0x2ec   : > { %v2821_v4 = vadd.f32 %v2792_v52, %v2452_v53  ;;  %v5534_v53 = vld [vmem:[#allocation10_spill] sm:$0xff]  ;;  %v2756_v37 = vadd.f32 %v2755_v61, %v2706_v58 }
 0x2ed   : > { %v2125_v49 = vadd.f32 %v5535_v8, %v5534_v53 }
 0x2ee   : > { %v2841_v46 = vadd.f32 %v5316_v50, %v2821_v4  ;;  %v5536_v4 = vld [vmem:[#allocation24_spill] sm:$0xff] }
 0x2ef   : > { %v2364_v63 = vadd.f32 %v5536_v4, %v2171_v29 }
 0x2f0   : > { %vm2857_vm12 = vcmp.ge.f32.partialorder %v2841_v46, 0.0  ;;  %v2873_v43 = vmul.f32 0.2, %v2841_v46 }
 0x2f1   : > { %v2454_v2 = vpop.f32.mrf.mxu3  ;;  %v2413_v23 = vadd.f32 %v5538_v12, %v2364_v63  ;;  %v5552_v63 = vld [vmem:[#allocation39_spill] sm:$0xff] }
 0x2f2   : > { %v2455_v26 = vadd.f32 %v2454_v2, %v2406_v44  ;;  %v2889_v33 = vsel %vm2857_vm12, %v2841_v46, %v2873_v43  ;;  %v5537_v46 = vld [vmem:[#allocation28_spill] sm:$0xff]  ;;  %v2802_v43 = vadd.f32 %v2801_v41, %v2753_v48  ;;  %v2804_v45 = vpop.f32.mrf.mxu2  ;;  %v2757_v47 = vpop.f32.mrf.mxu1 }
 0x2f3   : > { %v2901_v39 = vpack.c.bf16 %v2889_v33, %v2888_v24  ;;  %v2174_v55 = vadd.f32 %v5537_v46, %v2125_v49  ;;  %v5539_v2 = vld [vmem:[#allocation12_spill] sm:$0xff]  ;;  %v2708_v30 = vpop.f32.mrf.mxu0 }
 0x2f4   : > { %v2822_v7 = vadd.f32 %v2795_v28, %v2455_v26  ;;  %v5540_v26 = vld [vmem:[#allocation43_spill] sm:$0xff]  ;;  %v2758_v14 = vadd.f32 %v2757_v47, %v2708_v30 }
 0x2f5   : > { %3804 = vmatmul.msk.bf16.gmra.mxu3 %vm2942_vm10, %v2901_v39  ;;  %v2127_v24 = vadd.f32 %v5540_v26, %v5539_v2  ;;  %v5541_v39 = vld [vmem:[#allocation27_spill] sm:$0xff]  ;;  %v5554_v2 = vld [vmem:[#allocation38_spill] sm:$0xff] }
 0x2f6   : > { %v2842_v42 = vadd.f32 %v5316_v50, %v2822_v7  ;;  %v2367_v28 = vadd.f32 %v5541_v39, %v2174_v55  ;;  %v5555_v39 = vld [vmem:[#allocation40_spill] sm:$0xff] }
 0x2f7   : > { %v2176_v7 = vadd.f32 %v5542_v1, %v2127_v24 }
 0x2f8   : > { %v2874_v31 = vmul.f32 0.2, %v2842_v42  ;;  %vm2858_vm13 = vcmp.ge.f32.partialorder %v2842_v42, 0.0  ;;  %v2416_v0 = vadd.f32 %v5543_v15, %v2367_v28 }
 0x2f9   : > { %v2456_v34 = vpop.f32.mrf.mxu3  ;;  %v2369_v57 = vadd.f32 %v5546_v19, %v2176_v7 }
 0x2fa   : > { %v2457_v60 = vadd.f32 %v2456_v34, %v2408_v18  ;;  %v2890_v40 = vsel %vm2858_vm13, %v2842_v42, %v2874_v31  ;;  %v2805_v42 = vadd.f32 %v2804_v45, %v2756_v37  ;;  %v5547_v31 = vld [vmem:[#allocation34_spill] sm:$0xff]  ;;  %v2760_v54 = vpop.f32.mrf.mxu1 }
 0x2fb   : > { %v2418_v29 = vadd.f32 %v5548_v22, %v2369_v57 }
 0x2fc   : > { %v2823_v10 = vadd.f32 %v2797_v6, %v2457_v60  ;;  %v5544_v60 = vld [vmem:[#allocation13_spill] sm:$0xff] }
 0x2fd   : > { %v2130_v25 = vadd.f32 %v5545_v21, %v5544_v60 }
 0x2fe   : > { %v2843_v9 = vadd.f32 %v5316_v50, %v2823_v10  ;;  %v2806_v10 = vpop.f32.mrf.mxu2 }
 0x300   : > { %vm2859_vm14 = vcmp.ge.f32.partialorder %v2843_v9, 0.0  ;;  %v2875_v5 = vmul.f32 0.2, %v2843_v9 }
 0x301   : > { %v2459_v38 = vpop.f32.mrf.mxu3 }
 0x302   : > { %v2460_v51 = vadd.f32 %v2459_v38, %v2411_v35  ;;  %v2891_v56 = vsel %vm2859_vm14, %v2843_v9, %v2875_v5  ;;  %v2179_v9 = vadd.f32 %v5547_v31, %v2130_v25  ;;  %v2711_v5 = vpop.f32.mrf.mxu0  ;;  %v2807_v35 = vadd.f32 %v2806_v10, %v2758_v14 }
 0x303   : > { %v2902_v52 = vpack.c.bf16 %v2891_v56, %v2890_v40  ;;  %v5550_v40 = vld [vmem:[#allocation45_spill] sm:$0xff]  ;;  %v2761_v4 = vadd.f32 %v2760_v54, %v2711_v5 }
 0x304   : > { %v2824_v62 = vadd.f32 %v2800_v36, %v2460_v51  ;;  %v5549_v51 = vld [vmem:[#allocation14_spill] sm:$0xff]  ;;  %v5551_v36 = vld [vmem:[#allocation33_spill] sm:$0xff] }
 0x305   : > { %3805 = vmatmul.msk.bf16.gmra.mxu3 %vm2942_vm10, %v2902_v52  ;;  %v2132_v56 = vadd.f32 %v5550_v40, %v5549_v51  ;;  %v2372_v53 = vadd.f32 %v5551_v36, %v2179_v9 }
 0x306   : > { %v2844_v27 = vadd.f32 %v5316_v50, %v2824_v62  ;;  %v2809_v61 = vpop.f32.mrf.mxu2  ;;  %v5553_v62 = vld [vmem:[#allocation36_spill] sm:$0xff] }
 0x307   : > { %v2181_v58 = vadd.f32 %v5552_v63, %v2132_v56  ;;  %v2421_v46 = vadd.f32 %v5553_v62, %v2372_v53  ;;  %v2810_v45 = vadd.f32 %v2809_v61, %v2761_v4 }
 0x308   : > { %v2876_v17 = vmul.f32 0.2, %v2844_v27  ;;  %vm2860_vm15 = vcmp.ge.f32.partialorder %v2844_v27, 0.0 }
 0x309   : > { %v2461_v3 = vpop.f32.mrf.mxu3  ;;  %v2374_v26 = vadd.f32 %v5554_v2, %v2181_v58 }
 0x30a   : > { %v2462_v44 = vadd.f32 %v2461_v3, %v2413_v23  ;;  %v2892_v34 = vsel %vm2860_vm15, %v2844_v27, %v2876_v17  ;;  %v2713_v27 = vpop.f32.mrf.mxu0 }
 0x30b   : > { %v2423_v28 = vadd.f32 %v5555_v39, %v2374_v26 }
 0x30c   : > { %v2825_v33 = vadd.f32 %v2802_v43, %v2462_v44  ;;  %v2762_v43 = vpop.f32.mrf.mxu1 }
 0x30d   : > { %v2763_v24 = vadd.f32 %v2762_v43, %v2713_v27 }
 0x30e   : > { %v2845_v11 = vadd.f32 %v5316_v50, %v2825_v33  ;;  %v2811_v47 = vpop.f32.mrf.mxu2 }
 0x310   : > { %vm2861_vm2 = vcmp.ge.f32.partialorder %v2845_v11, 0.0  ;;  %v2877_v16 = vmul.f32 0.2, %v2845_v11 }
 0x311   : > { %v2464_v32 = vpop.f32.mrf.mxu3 }
 0x312   : > { %v2465_v18 = vadd.f32 %v2464_v32, %v2416_v0  ;;  %v2893_v6 = vsel %vm2861_vm2, %v2845_v11, %v2877_v16  ;;  %v2812_v11 = vadd.f32 %v2811_v47, %v2763_v24 }
 0x313   : > { %v2903_v59 = vpack.c.bf16 %v2893_v6, %v2892_v34  ;;  %v4126_v34 = vld [vmem:[%s5453_s10] ss:$0 sm:$0xff] }
 0x314   : > { %v2826_v13 = vadd.f32 %v2805_v42, %v2465_v18 }
 0x315   : > { %3806 = vmatmul.msk.bf16.gmra.mxu3 %vm2942_vm10, %v2903_v59 }
 0x316   : > { %v2846_v41 = vadd.f32 %v5316_v50, %v2826_v13 }
 0x318   : > { %v2878_v8 = vmul.f32 0.2, %v2846_v41  ;;  %vm2862_vm4 = vcmp.ge.f32.partialorder %v2846_v41, 0.0 }
 0x319   : > { %v2466_v20 = vpop.f32.mrf.mxu3 }
 0x31a   : > { %v2467_v38 = vadd.f32 %v2466_v20, %v2418_v29  ;;  %v2894_v23 = vsel %vm2862_vm4, %v2846_v41, %v2878_v8 }
 0x31c   : > { %v2827_v52 = vadd.f32 %v2807_v35, %v2467_v38 }
 0x31e   : > { %v2847_v49 = vadd.f32 %v5316_v50, %v2827_v52 }
 0x320   : > { %vm2863_vm5 = vcmp.ge.f32.partialorder %v2847_v49, 0.0  ;;  %v2879_v48 = vmul.f32 0.2, %v2847_v49 }
 0x321   : > { %v2469_v55 = vpop.f32.mrf.mxu3 }
 0x322   : > { %v2470_v12 = vadd.f32 %v2469_v55, %v2421_v46  ;;  %v2895_v3 = vsel %vm2863_vm5, %v2847_v49, %v2879_v48 }
 0x323   : > { %v2904_v44 = vpack.c.bf16 %v2895_v3, %v2894_v23 }
 0x324   : > { %v2828_v33 = vadd.f32 %v2810_v45, %v2470_v12 }
 0x325   : > { %3807 = vmatmul.msk.bf16.gmra.mxu3 %vm2942_vm10, %v2904_v44 }
 0x326   : > { %v2848_v37 = vadd.f32 %v5316_v50, %v2828_v33 }
 0x328   : > { %v2880_v7 = vmul.f32 0.2, %v2848_v37  ;;  %vm2864_vm6 = vcmp.ge.f32.partialorder %v2848_v37, 0.0 }
 0x329   : > { %v2471_v17 = vpop.f32.mrf.mxu3 }
 0x32a   : > { %v2472_v30 = vadd.f32 %v2471_v17, %v2423_v28  ;;  %v2896_v0 = vsel %vm2864_vm6, %v2848_v37, %v2880_v7 }
 0x32c   : > { %v2829_v1 = vadd.f32 %v2812_v11, %v2472_v30 }
 0x32e   : > { %v2849_v16 = vadd.f32 %v5316_v50, %v2829_v1 }
 0x330   : > { %vm2865_vm3 = vcmp.ge.f32.partialorder %v2849_v16, 0.0  ;;  %v2881_v15 = vmul.f32 0.2, %v2849_v16 }
 0x332   : > { %v2897_v32 = vsel %vm2865_vm3, %v2849_v16, %v2881_v15 }
 0x333   : > { %v2905_v18 = vpack.c.bf16 %v2897_v32, %v2896_v0 }
 0x335   : > { %3808 = vmatmul.msk.bf16.gmra.mxu3 %vm2942_vm10, %v2905_v18 }
 0x348   : > { %v2976_v6 = vpop.f32.mrf.mxu3 }
 0x349   : > { %v2977_v59 = vadd.f32 %v4126_v34, %v2976_v6 }
 0x34b   : > { %3016 = vxpose.xlu0.b32.start [1/16] (narrow) %v2977_v59, 16 }
 0x350   : > { %v2978_v42 = vpop.f32.mrf.mxu3 }
 0x351   : > { %v2979_v60 = vadd.f32 %v4126_v34, %v2978_v42 }
 0x353   : > { %3017 = vxpose.xlu0.b32.cont [2/16] (narrow) %v2979_v60, 16 }
 0x358   : > { %v2981_v21 = vpop.f32.mrf.mxu3 }
 0x359   : > { %v2982_v50 = vadd.f32 %v4126_v34, %v2981_v21 }
 0x35b   : > { %3018 = vxpose.xlu0.b32.cont [3/16] (narrow) %v2982_v50, 16 }
 0x360   : > { %v2983_v25 = vpop.f32.mrf.mxu3 }
 0x361   : > { %v2984_v19 = vadd.f32 %v4126_v34, %v2983_v25 }
 0x363   : > { %3019 = vxpose.xlu0.b32.cont [4/16] (narrow) %v2984_v19, 16 }
 0x368   : > { %v2986_v57 = vpop.f32.mrf.mxu3 }
 0x369   : > { %v2987_v10 = vadd.f32 %v4126_v34, %v2986_v57 }
 0x36b   : > { %3020 = vxpose.xlu0.b32.cont [5/16] (narrow) %v2987_v10, 16 }
 0x370   : > { %v2988_v14 = vpop.f32.mrf.mxu3 }
 0x371   : > { %v2989_v13 = vadd.f32 %v4126_v34, %v2988_v14 }
 0x373   : > { %3021 = vxpose.xlu0.b32.cont [6/16] (narrow) %v2989_v13, 16 }
 0x378   : > { %v2991_v31 = vpop.f32.mrf.mxu3 }
 0x379   : > { %v2992_v9 = vadd.f32 %v4126_v34, %v2991_v31 }
 0x37b   : > { %3022 = vxpose.xlu0.b32.cont [7/16] (narrow) %v2992_v9, 16 }
 0x380   : > { %v2993_v54 = vpop.f32.mrf.mxu3 }
 0x381   : > { %v2994_v22 = vadd.f32 %v4126_v34, %v2993_v54 }
 0x383   : > { %3023 = vxpose.xlu0.b32.cont [8/16] (narrow) %v2994_v22, 16 }
 0x388   : > { %v2996_v29 = vpop.f32.mrf.mxu3 }
 0x389   : > { %v2997_v5 = vadd.f32 %v4126_v34, %v2996_v29 }
 0x38b   : > { %3024 = vxpose.xlu0.b32.cont [9/16] (narrow) %v2997_v5, 16 }
 0x390   : > { %v2998_v20 = vpop.f32.mrf.mxu3 }
 0x391   : > { %v2999_v35 = vadd.f32 %v4126_v34, %v2998_v20 }
 0x393   : > { %3025 = vxpose.xlu0.b32.cont [10/16] (narrow) %v2999_v35, 16 }
 0x398   : > { %v3001_v41 = vpop.f32.mrf.mxu3 }
 0x399   : > { %v3002_v38 = vadd.f32 %v4126_v34, %v3001_v41 }
 0x39b   : > { %3026 = vxpose.xlu0.b32.cont [11/16] (narrow) %v3002_v38, 16 }
 0x3a0   : > { %v3003_v51 = vpop.f32.mrf.mxu3 }
 0x3a1   : > { %v3004_v40 = vadd.f32 %v4126_v34, %v3003_v51 }
 0x3a3   : > { %3027 = vxpose.xlu0.b32.cont [12/16] (narrow) %v3004_v40, 16 }
 0x3a8   : > { %v3006_v56 = vpop.f32.mrf.mxu3 }
 0x3a9   : > { %v3007_v52 = vadd.f32 %v4126_v34, %v3006_v56 }
 0x3ab   : > { %3028 = vxpose.xlu0.b32.cont [13/16] (narrow) %v3007_v52, 16 }
 0x3b0   : > { %v3008_v36 = vpop.f32.mrf.mxu3 }
 0x3b1   : > { %v3009_v53 = vadd.f32 %v4126_v34, %v3008_v36 }
 0x3b3   : > { %3029 = vxpose.xlu0.b32.cont [14/16] (narrow) %v3009_v53, 16 }
 0x3b8   : > { %v3011_v8 = vpop.f32.mrf.mxu3 }
 0x3b9   : > { %v3012_v49 = vadd.f32 %v4126_v34, %v3011_v8 }
 0x3bb   : > { %3030 = vxpose.xlu0.b32.cont [15/16] (narrow) %v3012_v49, 16 }
 0x3c0   : > { %v3013_v61 = vpop.f32.mrf.mxu3 }
 0x3c1   : > { %v3014_v4 = vadd.f32 %v4126_v34, %v3013_v61 }
 0x3c3   : > { %3031 = vxpose.xlu0.b32.end [16/16] (narrow) %v3014_v4, 16 }
 0x3ef   : > { %v3032_v63 = vpop.trf.xlu0 }
 0x3f0   : > { %3048 = vst [vmem:[%s622_s25] sm:$0xff] %v3032_v63 }
 0x3f4   : > { %3056 = sbr.rel (!%p4290_p5) target bundleno = 1025 (0x401), region = 68 }
 0x3f7   : > { %v3033_v58 = vpop.trf.xlu0  ;;  %v3091_v48 = vld [vmem:[%s622_s25] sm:$0xff] (%p4290_p5) }
 0x3f8   : > { %3049 = vst [vmem:[%s622_s25 + $0x8] sm:$0x3f] %v3033_v58 }
 0x3f9   : > { %3092 = vst [vmem:[%s3060_s17] sm:$0xff] %v3091_v48 }
 0x3ff   : > { %v3093_v62 = vld [vmem:[%s622_s25 + $0x8] sm:$0xff] }
 0x400   : > { %3094 = vst [vmem:[%s3060_s17 + $0x10] sm:$0xff] %v3093_v62 }
 0x401 PF: > { %s21_s23 = sadd.s32 1, %s4182_s23   ;;  %s5556_s19 = sld [smem:[#allocation3_spill]] }
 0x402   : > { %p18_p0 = scmp.ge.s32.totalorder %s21_s23, 6   ;;  %s5557_s20 = sld [smem:[#allocation4_spill]] }
 0x403   : > { %s5558_s21 = sld [smem:[#allocation5_spill]]  ;;  %s5560_s17 = smov %s4162_s18 }
 0x404   : > { %s5559_s22 = sld [smem:[#allocation6_spill]]  ;;  %s5561_s18 = smov %s4301_s13 }
 0x405   :  { %20 = sbr.rel (!%p18_p0) target bundleno = 7 (0x7), region = 148 }

</bundles_post_ra>
